<compile_context>
chip_gen: v5e
topology: v5e:2x2
jax: 0.10.0
libtpu: 0.0.40
codegen_flags: <defaults>
</compile_context>

<pallas_src>
import math

import jax
import jax.numpy as jnp
from jax.experimental import pallas as pl
from jax.experimental.pallas import tpu as pltpu

_INT32_MAX = jnp.iinfo(jnp.int32).max


def _round_up(x, m):
    return (x + m - 1) // m * m


# ---------------------------------------------------------------------------
# Kernel: fused squared-L2 distances + streaming top-k over the datastore
# (replaces the faiss index search inside KNN_Dstore_V3.retrieve_*)
# ---------------------------------------------------------------------------
def _knn_topk_kernel(q_ref, qn_ref, keys_ref, knorm_ref,
                     out_d_ref, out_i_ref, best_d, best_i):
    s = pl.program_id(0)                 # datastore split (parallel; 2 TCs on v7x)
    j = pl.program_id(2)                 # key-tile index within split (reduction)
    n_tiles = pl.num_programs(2)
    tb = q_ref.shape[0]
    tn = keys_ref.shape[1]
    kk = out_d_ref.shape[2]

    @pl.when(j == 0)
    def _init():
        best_d[...] = jnp.full((tb, kk), jnp.inf, jnp.float32)
        best_i[...] = jnp.zeros((tb, kk), jnp.int32)

    # Cross term on the MXU: bf16 x bf16 -> f32 acc, keys pre-transposed (d, tn).
    cross = jax.lax.dot_general(
        q_ref[...], keys_ref[...], (((1,), (0,)), ((), ())),
        preferred_element_type=jnp.float32)                       # (tb, tn)
    # ||q||^2 and ||k||^2 are precomputed outside the N loop.  Padded datastore
    # columns carry +inf norms -> dist = finite + inf = inf (never NaN, never
    # selected); padded query rows have qn = 0 and are sliced off by the caller.
    dist = jnp.maximum(qn_ref[...] - 2.0 * cross + knorm_ref[...], 0.0)

    # Skip the XLU-heavy best-K merge when no candidate in this tile beats the
    # current per-row worst (best_d stays sorted ascending, so this is safe).
    tile_min = jnp.min(dist, axis=-1, keepdims=True)              # (tb, 1)
    worst = best_d[:, kk - 1:kk]                                  # (tb, 1)
    any_better = jnp.max(jnp.where(tile_min < worst, 1.0, 0.0))

    @pl.when(any_better > 0.0)
    def _merge():
        col = jax.lax.broadcasted_iota(jnp.int32, (tb, tn), 1)
        gidx = (s * n_tiles + j) * tn + col                       # global row id
        # dist first: the wide tile stays lane-aligned at offset 0; only the
        # tiny (tb, kk) best slice is lane-misaligned.
        cd = jnp.concatenate([dist, best_d[...]], axis=-1)        # (tb, tn+kk)
        ci = jnp.concatenate([gidx, best_i[...]], axis=-1)
        d_cols, i_cols = [], []
        for _ in range(kk):                                       # K small & static
            m = jnp.min(cd, axis=-1, keepdims=True)               # best distance
            g = jnp.min(jnp.where(cd == m, ci, _INT32_MAX),       # its (smallest) index
                        axis=-1, keepdims=True)
            d_cols.append(m)
            i_cols.append(g)
            cd = jnp.where((cd == m) & (ci == g), jnp.inf, cd)    # remove chosen
        best_d[...] = jnp.concatenate(d_cols, axis=-1)            # ascending (faiss order)
        best_i[...] = jnp.concatenate(i_cols, axis=-1)

    @pl.when(j == n_tiles - 1)
    def _finalize():
        out_d_ref[0] = best_d[...]
        out_i_ref[0] = best_i[...]


def prepare_datastore_keys(keys, tn_max=1024):
    """One-time datastore prep for the Pallas scan:
       * keys cast to bf16 and stored TRANSPOSED (d, n_pad) -> canonical MXU
         orientation, datastore axis on lanes,
       * key squared-norms precomputed in f32 (from the bf16-rounded keys so the
         distance expansion is self-consistent); padded columns get +inf,
       * N padded to a multiple of 2*tn for large stores so the datastore axis
         can be split across the two TensorCores of a v7x chip."""
    n, d = keys.shape
    if n >= tn_max:
        tn = tn_max
        n_pad = _round_up(n, 2 * tn)
    else:
        tn = _round_up(n, 128)
        n_pad = tn
    kb16 = keys.astype(jnp.bfloat16)
    kb32 = kb16.astype(jnp.float32)
    norms = jnp.sum(kb32 * kb32, axis=-1)                          # (n,) f32
    norms = jnp.pad(norms, (0, n_pad - n), constant_values=jnp.inf)[None, :]
    keys_t = jnp.pad(kb16.T, ((0, 0), (0, n_pad - n)))             # (d, n_pad) bf16
    return keys_t, norms, n, tn


def knn_search(query, prepared_keys, k):
    """Exact k-NN: squared-L2 distance scan + streaming top-k (Pallas)."""
    keys_t, key_norms, n_valid, tn = prepared_keys
    d, n_pad = keys_t.shape
    b = query.shape[0]
    assert query.shape[1] == d
    assert n_valid >= k, "datastore smaller than k"

    if b <= 128:
        b_pad = _round_up(max(b, 16), 16)      # bf16 packs 16 rows per vreg group
        tb = b_pad
    else:                                      # fill the MXU with 128-row q tiles
        b_pad = _round_up(b, 128)
        tb = 128

    qf = query.astype(jnp.float32)
    q_bf16 = qf.astype(jnp.bfloat16)
    qn = jnp.sum(qf * qf, axis=-1, keepdims=True)                  # (b, 1) f32
    if b_pad != b:
        q_bf16 = jnp.pad(q_bf16, ((0, b_pad - b), (0, 0)))
        qn = jnp.pad(qn, ((0, b_pad - b), (0, 0)))

    n_tiles_total = n_pad // tn
    b_tiles = b_pad // tb
    # Single query tile -> split the datastore across a leading parallel axis so
    # both TensorCores are busy on v7x (harmless / no-op elsewhere).
    n_splits = 2 if (b_tiles == 1 and n_tiles_total >= 2
                     and n_tiles_total % 2 == 0) else 1
    ntps = n_tiles_total // n_splits           # key tiles per split

    out_d, out_i = pl.pallas_call(
        _knn_topk_kernel,
        out_shape=(
            jax.ShapeDtypeStruct((n_splits, b_pad, k), jnp.float32),
            jax.ShapeDtypeStruct((n_splits, b_pad, k), jnp.int32),
        ),
        grid_spec=pltpu.PrefetchScalarGridSpec(
            num_scalar_prefetch=0,
            grid=(n_splits, b_tiles, ntps),
            in_specs=[
                pl.BlockSpec((tb, d), lambda s, i, j: (i, 0)),            # q (bf16)
                pl.BlockSpec((tb, 1), lambda s, i, j: (i, 0)),            # ||q||^2
                pl.BlockSpec((d, tn), lambda s, i, j: (0, s * ntps + j)),  # keys^T (bf16)
                pl.BlockSpec((1, tn), lambda s, i, j: (0, s * ntps + j)),  # ||k||^2
            ],
            out_specs=[
                pl.BlockSpec((1, tb, k), lambda s, i, j: (s, i, 0)),
                pl.BlockSpec((1, tb, k), lambda s, i, j: (s, i, 0)),
            ],
            scratch_shapes=[
                pltpu.VMEM((tb, k), jnp.float32),      # running best distances
                pltpu.VMEM((tb, k), jnp.int32),        # running best indices
            ]),
        compiler_params=pltpu.CompilerParams(
            dimension_semantics=("parallel", "parallel", "arbitrary")),
    )(q_bf16, qn, keys_t, key_norms)

    if n_splits > 1:
        # Merge the per-split top-k candidates (2K per row) in XLA.
        d_cand = jnp.swapaxes(out_d, 0, 1).reshape(b_pad, n_splits * k)
        i_cand = jnp.swapaxes(out_i, 0, 1).reshape(b_pad, n_splits * k)
        neg_top, pos = jax.lax.top_k(-d_cand, k)
        D = -neg_top
        I = jnp.take_along_axis(i_cand, pos, axis=1)
    else:
        D, I = out_d[0], out_i[0]
    return D[:b], I[:b]


# ---------------------------------------------------------------------------
# Tiny meta-MLP: Linear -> ReLU -> Dropout(identity, eval) -> Linear -> Softmax
# Left to XLA per perf review (kernel launch overhead + lane-sparse 9/32/1
# outputs dominate at K=8, hid=32).
# ---------------------------------------------------------------------------
def _meta_mlp(x, params):
    w1, b1, w2, b2 = params
    h = jnp.maximum(x @ w1 + b1, 0.0)
    logits = h @ w2 + b2
    return jax.nn.softmax(logits, axis=-1)


# ---------------------------------------------------------------------------
# Deterministic parameter initialization (shapes as in the torch __init__)
# ---------------------------------------------------------------------------
def _xavier_normal(key, shape, gain):
    fan_in, fan_out = shape
    std = gain * math.sqrt(2.0 / (fan_in + fan_out))
    return std * jax.random.normal(key, shape, dtype=jnp.float32)


def _linear_weight(key, in_dim, out_dim):
    bound = 1.0 / math.sqrt(in_dim)
    return jax.random.uniform(key, (in_dim, out_dim), jnp.float32, -bound, bound)


def _linear_bias(key, fan_in, out_dim):
    bound = 1.0 / math.sqrt(fan_in)
    return jax.random.uniform(key, (1, out_dim), jnp.float32, -bound, bound)


class Args:
    k = 8
    k_mol = 8
    k_pro = 8
    k_lambda_net_hid_size = 32
    k_lambda_net_hid_size_mol = 32
    k_lambda_net_hid_size_pro = 32
    k_lambda_net_dropout_rate = 0.0          # eval mode: Dropout is identity
    knn_lambda_type = 'trainable'
    knn_temperature_type = 'trainable'
    knn_k_type = 'trainable'
    label_value_as_feature = True


class KnnMetaNetworkPallas:
    """JAX/Pallas port of KnnMetaNetwork (eval-mode forward)."""

    def __init__(self, args, datastores, key):
        self.args = args
        self.label_value_as_feature = args.label_value_as_feature
        (ds_label_keys, self.ds_label_values,
         ds_mol_keys, self.ds_mol_values,
         ds_pro_keys, self.ds_pro_values) = datastores

        # one-time layout/dtype/norm prep of the datastore keys for the scan
        self.ds_label_keys = prepare_datastore_keys(ds_label_keys)
        self.ds_mol_keys = prepare_datastore_keys(ds_mol_keys)
        self.ds_pro_keys = prepare_datastore_keys(ds_pro_keys)

        ks = jax.random.split(key, 12)
        k, hid = args.k, args.k_lambda_net_hid_size
        in_dim = 2 * k if args.label_value_as_feature else k

        # label net weights stored (in, out); torch xavier gains on D / V slices.
        w1_d = _xavier_normal(ks[0], (k, hid), 0.01)
        if args.label_value_as_feature:
            w1_v = _xavier_normal(ks[1], (k, hid), 0.1)
            w1 = jnp.concatenate([w1_d, w1_v], axis=0)
        else:
            w1 = w1_d
        self.label_params = (
            w1,
            _linear_bias(ks[2], in_dim, hid),
            _linear_weight(ks[3], hid, 1 + k),
            _linear_bias(ks[4], hid, 1 + k),
        )

        k_mol, hid_mol = args.k_mol, args.k_lambda_net_hid_size_mol
        self.mol_params = (
            _xavier_normal(ks[5], (k_mol, hid_mol), 0.01),
            _linear_bias(ks[6], k_mol, hid_mol),
            _linear_weight(ks[7], hid_mol, 1 + k_mol),
            _linear_bias(ks[8], hid_mol, 1 + k_mol),
        )

        k_pro, hid_pro = args.k_pro, args.k_lambda_net_hid_size_pro
        self.pro_params = (
            _xavier_normal(ks[9], (k_pro, hid_pro), 0.01),
            _linear_bias(ks[10], k_pro, hid_pro),
            _linear_weight(ks[11], hid_pro, 1 + k_pro),
            _linear_bias(jax.random.fold_in(key, 99), hid_pro, 1 + k_pro),
        )

    # ---------------- retrieval (datastore) ----------------
    def _retrieve(self, query, prepared_keys, values, k):
        # TODO(synk): the faiss index search inside KNN_Dstore_V3 is replaced by
        # an exact brute-force scan with in-kernel streaming top-k; the value
        # gather stays in XLA.
        D, I = knn_search(query, prepared_keys, k)        # (B, k), (B, k)
        V = jnp.take(values, I, axis=0)                   # (B, k) or (B, k, d)
        return D, I, V

    # ---------------- forward ----------------
    def forward(self, model_prediction, query, mode='label'):
        if mode == 'label':
            D, _I, V = self._retrieve(query, self.ds_label_keys,
                                      self.ds_label_values, self.args.k)
            if self.label_value_as_feature:
                net_in = jnp.concatenate([D, V], axis=-1)            # (B, 2k)
            else:
                net_in = D
            probs = _meta_mlp(net_in, self.label_params)             # (B, 1+k)
            knn_V = jnp.concatenate(
                [model_prediction.astype(jnp.float32), V], axis=-1)  # (B, 1+k)
            return jnp.sum(probs * knn_V, axis=-1)                   # (B,)

        elif mode in ('mol', 'pro'):
            if mode == 'mol':
                prepared, values, k, params = (self.ds_mol_keys, self.ds_mol_values,
                                               self.args.k_mol, self.mol_params)
            else:
                prepared, values, k, params = (self.ds_pro_keys, self.ds_pro_values,
                                               self.args.k_pro, self.pro_params)
            D, _I, V = self._retrieve(query, prepared, values, k)    # V: (B,k,d)
            probs = _meta_mlp(D, params)                             # (B, 1+k)
            knn_V = jnp.concatenate(
                [query[:, None, :].astype(jnp.float32), V], axis=-2) # (B,1+k,d)
            return jnp.sum(probs[..., None] * knn_V, axis=-2)        # (B, d)
        else:
            raise ValueError(f"unknown mode {mode!r}")


if __name__ == "__main__":
    key = jax.random.PRNGKey(0)
    (k_q, k_pred, k_dsk, k_dsv, k_mq, k_mk, k_mv, k_pq, k_pk, k_pv, k_params
     ) = jax.random.split(key, 11)

    B, D_FEAT, N_DS = 8, 128, 256
    args = Args()

    # synthetic datastores (deterministic)
    ds_label_keys = jax.random.normal(k_dsk, (N_DS, D_FEAT), jnp.float32)
    ds_label_values = jax.random.normal(k_dsv, (N_DS,), jnp.float32)      # scalar labels
    ds_mol_keys = jax.random.normal(k_mk, (N_DS, D_FEAT), jnp.float32)
    ds_mol_values = jax.random.normal(k_mv, (N_DS, D_FEAT), jnp.float32)  # vector values
    ds_pro_keys = jax.random.normal(k_pk, (N_DS, D_FEAT), jnp.float32)
    ds_pro_values = jax.random.normal(k_pv, (N_DS, D_FEAT), jnp.float32)

    net = KnnMetaNetworkPallas(
        args,
        (ds_label_keys, ds_label_values, ds_mol_keys, ds_mol_values,
         ds_pro_keys, ds_pro_values),
        k_params,
    )

    query = jax.random.normal(k_q, (B, D_FEAT), jnp.float32)
    model_prediction = jax.random.normal(k_pred, (B, 1), jnp.float32)
    query_mol = jax.random.normal(k_mq, (B, D_FEAT), jnp.float32)
    query_pro = jax.random.normal(jax.random.fold_in(k_pq, 1), (B, D_FEAT), jnp.float32)

    out_label = net.forward(model_prediction, query, mode='label')   # (B,)
    out_mol = net.forward(None, query_mol, mode='mol')               # (B, D_FEAT)
    out_pro = net.forward(None, query_pro, mode='pro')               # (B, D_FEAT)
    jax.block_until_ready((out_label, out_mol, out_pro))

    assert out_label.shape == (B,)
    assert out_mol.shape == (B, D_FEAT)
    assert out_pro.shape == (B, D_FEAT)
    assert bool(jnp.all(jnp.isfinite(out_label)))
    assert bool(jnp.all(jnp.isfinite(out_mol)))
    assert bool(jnp.all(jnp.isfinite(out_pro)))

    # Correctness check 1: single-tile retrieval vs a pure-JAX reference built
    # with the same bf16-quantized operands (qn from the exact f32 query,
    # cross term / key norms from the bf16-rounded keys — deliberate choice).
    kb = ds_label_keys.astype(jnp.bfloat16).astype(jnp.float32)
    qb = query.astype(jnp.bfloat16).astype(jnp.float32)
    ref_dist = (jnp.sum(query * query, -1, keepdims=True)
                - 2.0 * jnp.matmul(qb, kb.T, precision=jax.lax.Precision.HIGHEST)
                + jnp.sum(kb * kb, -1)[None, :])
    ref_topk = -jax.lax.top_k(-jnp.maximum(ref_dist, 0.0), args.k)[0]
    D_label, _ = knn_search(query, net.ds_label_keys, args.k)
    assert bool(jnp.allclose(D_label, ref_topk, rtol=2e-2, atol=1e-1))

    # Correctness check 2: multi-tile + dual-core-split path (exercises the
    # merge gating, padded +inf columns and the XLA cross-split top-k merge).
    k2_keys, k2_q = jax.random.split(jax.random.fold_in(key, 7), 2)
    N2, D2, K2 = 300, 64, 5
    keys2 = jax.random.normal(k2_keys, (N2, D2), jnp.float32)
    q2 = jax.random.normal(k2_q, (6, D2), jnp.float32)
    prep2 = prepare_datastore_keys(keys2, tn_max=128)     # 4 tiles, 2 splits
    D2_out, _ = knn_search(q2, prep2, K2)
    kb2 = keys2.astype(jnp.bfloat16).astype(jnp.float32)
    qb2 = q2.astype(jnp.bfloat16).astype(jnp.float32)
    ref2 = (jnp.sum(q2 * q2, -1, keepdims=True)
            - 2.0 * jnp.matmul(qb2, kb2.T, precision=jax.lax.Precision.HIGHEST)
            + jnp.sum(kb2 * kb2, -1)[None, :])
    ref_top2 = -jax.lax.top_k(-jnp.maximum(ref2, 0.0), K2)[0]
    assert bool(jnp.allclose(D2_out, ref_top2, rtol=2e-2, atol=1e-1))

    print("KERNEL_OK")
</pallas_src>

<mosaic_0001>
module attributes {stable_mosaic.version = 11 : i64} {
  func.func @_knn_topk_kernel(%arg0: i32, %arg1: i32, %arg2: i32, %arg3: memref<16x128xbf16, #tpu.memory_space<vmem>>, %arg4: memref<16x1xf32, #tpu.memory_space<vmem>>, %arg5: memref<128x256xbf16, #tpu.memory_space<vmem>>, %arg6: memref<1x256xf32, #tpu.memory_space<vmem>>, %arg7: memref<1x16x8xf32, #tpu.memory_space<vmem>>, %arg8: memref<1x16x8xi32, #tpu.memory_space<vmem>>, %arg9: memref<16x8xf32, #tpu.memory_space<vmem>>, %arg10: memref<16x8xi32, #tpu.memory_space<vmem>>) attributes {dimension_semantics = [#tpu.dimension_semantics<parallel>, #tpu.dimension_semantics<parallel>, #tpu.dimension_semantics<arbitrary>], iteration_bounds = array<i64: 1, 1, 1>, scalar_prefetch = 0 : i64, scratch_operands = 2 : i64, tpu.core_type = #tpu.core_type<tc>, window_params = [{transform_indices = @transform_0, window_bounds = array<i64: 16, 128>}, {transform_indices = @transform_1, window_bounds = array<i64: 16, 1>}, {transform_indices = @transform_2, window_bounds = array<i64: 128, 256>}, {transform_indices = @transform_3, window_bounds = array<i64: 1, 256>}, {transform_indices = @transform_4, window_bounds = array<i64: 1, 16, 8>}, {transform_indices = @transform_5, window_bounds = array<i64: 1, 16, 8>}]} {
    %c0_i32 = arith.constant 0 : i32
    %0 = arith.cmpi eq, %arg2, %c0_i32 : i32
    %1 = arith.extui %0 : i1 to i32
    %c0_i32_0 = arith.constant 0 : i32
    %2 = arith.cmpi ne, %1, %c0_i32_0 : i32
    scf.if %2 {
      %cst_19 = arith.constant 0x7F800000 : f32
      %33 = vector.broadcast %cst_19 : f32 to vector<16x8xf32>
      %c0_20 = arith.constant 0 : index
      %c0_21 = arith.constant 0 : index
      %34 = vector.load %arg9[%c0_20, %c0_21] : memref<16x8xf32, #tpu.memory_space<vmem>>, vector<16x8xf32>
      tpu.vector_store %arg9[%c0_20, %c0_21], %33 {strides = array<i32>} : memref<16x8xf32, #tpu.memory_space<vmem>>, vector<16x8xf32>,
      %c0_i32_22 = arith.constant 0 : i32
      %35 = vector.broadcast %c0_i32_22 : i32 to vector<16x8xi32>
      %c0_23 = arith.constant 0 : index
      %c0_24 = arith.constant 0 : index
      %36 = vector.load %arg10[%c0_23, %c0_24] : memref<16x8xi32, #tpu.memory_space<vmem>>, vector<16x8xi32>
      tpu.vector_store %arg10[%c0_23, %c0_24], %35 {strides = array<i32>} : memref<16x8xi32, #tpu.memory_space<vmem>>, vector<16x8xi32>,
    } else {
    }
    %c0 = arith.constant 0 : index
    %c0_1 = arith.constant 0 : index
    %3 = vector.load %arg3[%c0, %c0_1] : memref<16x128xbf16, #tpu.memory_space<vmem>>, vector<16x128xbf16>
    %c0_2 = arith.constant 0 : index
    %c0_3 = arith.constant 0 : index
    %4 = vector.load %arg5[%c0_2, %c0_3] : memref<128x256xbf16, #tpu.memory_space<vmem>>, vector<128x256xbf16>
    %cst = arith.constant dense<0.000000e+00> : vector<16x256xf32>
    %5 = tpu.matmul %3, %4, %cst {dimension_numbers = #tpu.dot_dimension_numbers<[1], [0], [0], [1], [0, 0, 1, 1], [], []>} : vector<16x128xbf16>, vector<128x256xbf16>, vector<16x256xf32> -> vector<16x256xf32>
    %c0_4 = arith.constant 0 : index
    %c0_5 = arith.constant 0 : index
    %6 = vector.load %arg4[%c0_4, %c0_5] : memref<16x1xf32, #tpu.memory_space<vmem>>, vector<16x1xf32>
    %cst_6 = arith.constant 2.000000e+00 : f32
    %7 = vector.broadcast %cst_6 : f32 to vector<16x256xf32>
    %8 = arith.mulf %7, %5 : vector<16x256xf32>
    %9 = vector.broadcast %6 : vector<16x1xf32> to vector<16x256xf32>
    %10 = arith.subf %9, %8 : vector<16x256xf32>
    %c0_7 = arith.constant 0 : index
    %c0_8 = arith.constant 0 : index
    %11 = vector.load %arg6[%c0_7, %c0_8] : memref<1x256xf32, #tpu.memory_space<vmem>>, vector<1x256xf32>
    %12 = vector.broadcast %11 : vector<1x256xf32> to vector<16x256xf32>
    %13 = arith.addf %10, %12 : vector<16x256xf32>
    %cst_9 = arith.constant 0.000000e+00 : f32
    %14 = vector.broadcast %cst_9 : f32 to vector<16x256xf32>
    %15 = arith.maximumf %13, %14 : vector<16x256xf32>
    %cst_10 = arith.constant dense<0x7F800000> : vector<16xf32>
    %16 = vector.multi_reduction <minimumf>, %15, %cst_10 [1] : vector<16x256xf32> to vector<16xf32>
    %17 = vector.shape_cast %16 : vector<16xf32> to vector<16x1xf32>
    %c0_11 = arith.constant 0 : index
    %c7 = arith.constant 7 : index
    %18 = vector.load %arg9[%c0_11, %c7] : memref<16x8xf32, #tpu.memory_space<vmem>>, vector<16x1xf32>
    %19 = arith.cmpf olt, %17, %18 : vector<16x1xf32>
    %cst_12 = arith.constant 1.000000e+00 : f32
    %cst_13 = arith.constant 0.000000e+00 : f32
    %20 = vector.broadcast %cst_12 : f32 to vector<16x1xf32>
    %21 = vector.broadcast %cst_13 : f32 to vector<16x1xf32>
    %22 = arith.select %19, %20, %21 : vector<16x1xi1>, vector<16x1xf32>
    %23 = vector.shape_cast %22 : vector<16x1xf32> to vector<1x16x1xf32>
    %cst_14 = arith.constant dense<0xFF800000> : vector<1xf32>
    %24 = vector.multi_reduction <maximumf>, %23, %cst_14 [1, 2] : vector<1x16x1xf32> to vector<1xf32>
    %25 = vector.shape_cast %24 : vector<1xf32> to vector<1x1x1xf32>
    %26 = vector.extract %25[0, 0, 0] : f32 from vector<1x1x1xf32>
    %cst_15 = arith.constant 0.000000e+00 : f32
    %27 = arith.cmpf ogt, %26, %cst_15 : f32
    %28 = arith.extui %27 : i1 to i32
    %c0_i32_16 = arith.constant 0 : i32
    %29 = arith.cmpi ne, %28, %c0_i32_16 : i32
    scf.if %29 {
      %33 = tpu.iota {dimensions = array<i32: 1>} : vector<16x256xi32>
      %c1_i32 = arith.constant 1 : i32
      %34 = arith.muli %arg0, %c1_i32 : i32
      %35 = arith.addi %34, %arg2 : i32
      %c256_i32 = arith.constant 256 : i32
      %36 = arith.muli %35, %c256_i32 : i32
      %37 = vector.broadcast %36 : i32 to vector<16x256xi32>
      %38 = arith.addi %37, %33 : vector<16x256xi32>
      %c0_19 = arith.constant 0 : index
      %c0_20 = arith.constant 0 : index
      %39 = vector.load %arg9[%c0_19, %c0_20] : memref<16x8xf32, #tpu.memory_space<vmem>>, vector<16x8xf32>
      %40 = tpu.concatenate %15, %39 in 1 : vector<16x256xf32>, vector<16x8xf32> -> vector<16x264xf32>
      %c0_21 = arith.constant 0 : index
      %c0_22 = arith.constant 0 : index
      %41 = vector.load %arg10[%c0_21, %c0_22] : memref<16x8xi32, #tpu.memory_space<vmem>>, vector<16x8xi32>
      %42 = tpu.concatenate %38, %41 in 1 : vector<16x256xi32>, vector<16x8xi32> -> vector<16x264xi32>
      %cst_23 = arith.constant dense<0x7F800000> : vector<16xf32>
      %43 = vector.multi_reduction <minimumf>, %40, %cst_23 [1] : vector<16x264xf32> to vector<16xf32>
      %44 = vector.shape_cast %43 : vector<16xf32> to vector<16x1xf32>
      %45 = vector.broadcast %44 : vector<16x1xf32> to vector<16x264xf32>
      %46 = arith.cmpf oeq, %40, %45 : vector<16x264xf32>
      %c2147483647_i32 = arith.constant 2147483647 : i32
      %47 = vector.broadcast %c2147483647_i32 : i32 to vector<16x264xi32>
      %48 = arith.select %46, %42, %47 : vector<16x264xi1>, vector<16x264xi32>
      %cst_24 = arith.constant dense<2147483647> : vector<16xi32>
      %49 = vector.multi_reduction <minsi>, %48, %cst_24 [1] : vector<16x264xi32> to vector<16xi32>
      %50 = vector.shape_cast %49 : vector<16xi32> to vector<16x1xi32>
      %51 = vector.broadcast %44 : vector<16x1xf32> to vector<16x264xf32>
      %52 = arith.cmpf oeq, %40, %51 : vector<16x264xf32>
      %53 = vector.broadcast %50 : vector<16x1xi32> to vector<16x264xi32>
      %54 = arith.cmpi eq, %42, %53 : vector<16x264xi32>
      %55 = arith.andi %52, %54 : vector<16x264xi1>
      %cst_25 = arith.constant 0x7F800000 : f32
      %56 = vector.broadcast %cst_25 : f32 to vector<16x264xf32>
      %57 = arith.select %55, %56, %40 : vector<16x264xi1>, vector<16x264xf32>
      %cst_26 = arith.constant dense<0x7F800000> : vector<16xf32>
      %58 = vector.multi_reduction <minimumf>, %57, %cst_26 [1] : vector<16x264xf32> to vector<16xf32>
      %59 = vector.shape_cast %58 : vector<16xf32> to vector<16x1xf32>
      %60 = vector.broadcast %59 : vector<16x1xf32> to vector<16x264xf32>
      %61 = arith.cmpf oeq, %57, %60 : vector<16x264xf32>
      %c2147483647_i32_27 = arith.constant 2147483647 : i32
      %62 = vector.broadcast %c2147483647_i32_27 : i32 to vector<16x264xi32>
      %63 = arith.select %61, %42, %62 : vector<16x264xi1>, vector<16x264xi32>
      %cst_28 = arith.constant dense<2147483647> : vector<16xi32>
      %64 = vector.multi_reduction <minsi>, %63, %cst_28 [1] : vector<16x264xi32> to vector<16xi32>
      %65 = vector.shape_cast %64 : vector<16xi32> to vector<16x1xi32>
      %66 = vector.broadcast %59 : vector<16x1xf32> to vector<16x264xf32>
      %67 = arith.cmpf oeq, %57, %66 : vector<16x264xf32>
      %68 = vector.broadcast %65 : vector<16x1xi32> to vector<16x264xi32>
      %69 = arith.cmpi eq, %42, %68 : vector<16x264xi32>
      %70 = arith.andi %67, %69 : vector<16x264xi1>
      %cst_29 = arith.constant 0x7F800000 : f32
      %71 = vector.broadcast %cst_29 : f32 to vector<16x264xf32>
      %72 = arith.select %70, %71, %57 : vector<16x264xi1>, vector<16x264xf32>
      %cst_30 = arith.constant dense<0x7F800000> : vector<16xf32>
      %73 = vector.multi_reduction <minimumf>, %72, %cst_30 [1] : vector<16x264xf32> to vector<16xf32>
      %74 = vector.shape_cast %73 : vector<16xf32> to vector<16x1xf32>
      %75 = vector.broadcast %74 : vector<16x1xf32> to vector<16x264xf32>
      %76 = arith.cmpf oeq, %72, %75 : vector<16x264xf32>
      %c2147483647_i32_31 = arith.constant 2147483647 : i32
      %77 = vector.broadcast %c2147483647_i32_31 : i32 to vector<16x264xi32>
      %78 = arith.select %76, %42, %77 : vector<16x264xi1>, vector<16x264xi32>
      %cst_32 = arith.constant dense<2147483647> : vector<16xi32>
      %79 = vector.multi_reduction <minsi>, %78, %cst_32 [1] : vector<16x264xi32> to vector<16xi32>
      %80 = vector.shape_cast %79 : vector<16xi32> to vector<16x1xi32>
      %81 = vector.broadcast %74 : vector<16x1xf32> to vector<16x264xf32>
      %82 = arith.cmpf oeq, %72, %81 : vector<16x264xf32>
      %83 = vector.broadcast %80 : vector<16x1xi32> to vector<16x264xi32>
      %84 = arith.cmpi eq, %42, %83 : vector<16x264xi32>
      %85 = arith.andi %82, %84 : vector<16x264xi1>
      %cst_33 = arith.constant 0x7F800000 : f32
      %86 = vector.broadcast %cst_33 : f32 to vector<16x264xf32>
      %87 = arith.select %85, %86, %72 : vector<16x264xi1>, vector<16x264xf32>
      %cst_34 = arith.constant dense<0x7F800000> : vector<16xf32>
      %88 = vector.multi_reduction <minimumf>, %87, %cst_34 [1] : vector<16x264xf32> to vector<16xf32>
      %89 = vector.shape_cast %88 : vector<16xf32> to vector<16x1xf32>
      %90 = vector.broadcast %89 : vector<16x1xf32> to vector<16x264xf32>
      %91 = arith.cmpf oeq, %87, %90 : vector<16x264xf32>
      %c2147483647_i32_35 = arith.constant 2147483647 : i32
      %92 = vector.broadcast %c2147483647_i32_35 : i32 to vector<16x264xi32>
      %93 = arith.select %91, %42, %92 : vector<16x264xi1>, vector<16x264xi32>
      %cst_36 = arith.constant dense<2147483647> : vector<16xi32>
      %94 = vector.multi_reduction <minsi>, %93, %cst_36 [1] : vector<16x264xi32> to vector<16xi32>
      %95 = vector.shape_cast %94 : vector<16xi32> to vector<16x1xi32>
      %96 = vector.broadcast %89 : vector<16x1xf32> to vector<16x264xf32>
      %97 = arith.cmpf oeq, %87, %96 : vector<16x264xf32>
      %98 = vector.broadcast %95 : vector<16x1xi32> to vector<16x264xi32>
      %99 = arith.cmpi eq, %42, %98 : vector<16x264xi32>
      %100 = arith.andi %97, %99 : vector<16x264xi1>
      %cst_37 = arith.constant 0x7F800000 : f32
      %101 = vector.broadcast %cst_37 : f32 to vector<16x264xf32>
      %102 = arith.select %100, %101, %87 : vector<16x264xi1>, vector<16x264xf32>
      %cst_38 = arith.constant dense<0x7F800000> : vector<16xf32>
      %103 = vector.multi_reduction <minimumf>, %102, %cst_38 [1] : vector<16x264xf32> to vector<16xf32>
      %104 = vector.shape_cast %103 : vector<16xf32> to vector<16x1xf32>
      %105 = vector.broadcast %104 : vector<16x1xf32> to vector<16x264xf32>
      %106 = arith.cmpf oeq, %102, %105 : vector<16x264xf32>
      %c2147483647_i32_39 = arith.constant 2147483647 : i32
      %107 = vector.broadcast %c2147483647_i32_39 : i32 to vector<16x264xi32>
      %108 = arith.select %106, %42, %107 : vector<16x264xi1>, vector<16x264xi32>
      %cst_40 = arith.constant dense<2147483647> : vector<16xi32>
      %109 = vector.multi_reduction <minsi>, %108, %cst_40 [1] : vector<16x264xi32> to vector<16xi32>
      %110 = vector.shape_cast %109 : vector<16xi32> to vector<16x1xi32>
      %111 = vector.broadcast %104 : vector<16x1xf32> to vector<16x264xf32>
      %112 = arith.cmpf oeq, %102, %111 : vector<16x264xf32>
      %113 = vector.broadcast %110 : vector<16x1xi32> to vector<16x264xi32>
      %114 = arith.cmpi eq, %42, %113 : vector<16x264xi32>
      %115 = arith.andi %112, %114 : vector<16x264xi1>
      %cst_41 = arith.constant 0x7F800000 : f32
      %116 = vector.broadcast %cst_41 : f32 to vector<16x264xf32>
      %117 = arith.select %115, %116, %102 : vector<16x264xi1>, vector<16x264xf32>
      %cst_42 = arith.constant dense<0x7F800000> : vector<16xf32>
      %118 = vector.multi_reduction <minimumf>, %117, %cst_42 [1] : vector<16x264xf32> to vector<16xf32>
      %119 = vector.shape_cast %118 : vector<16xf32> to vector<16x1xf32>
      %120 = vector.broadcast %119 : vector<16x1xf32> to vector<16x264xf32>
      %121 = arith.cmpf oeq, %117, %120 : vector<16x264xf32>
      %c2147483647_i32_43 = arith.constant 2147483647 : i32
      %122 = vector.broadcast %c2147483647_i32_43 : i32 to vector<16x264xi32>
      %123 = arith.select %121, %42, %122 : vector<16x264xi1>, vector<16x264xi32>
      %cst_44 = arith.constant dense<2147483647> : vector<16xi32>
      %124 = vector.multi_reduction <minsi>, %123, %cst_44 [1] : vector<16x264xi32> to vector<16xi32>
      %125 = vector.shape_cast %124 : vector<16xi32> to vector<16x1xi32>
      %126 = vector.broadcast %119 : vector<16x1xf32> to vector<16x264xf32>
      %127 = arith.cmpf oeq, %117, %126 : vector<16x264xf32>
      %128 = vector.broadcast %125 : vector<16x1xi32> to vector<16x264xi32>
      %129 = arith.cmpi eq, %42, %128 : vector<16x264xi32>
      %130 = arith.andi %127, %129 : vector<16x264xi1>
      %cst_45 = arith.constant 0x7F800000 : f32
      %131 = vector.broadcast %cst_45 : f32 to vector<16x264xf32>
      %132 = arith.select %130, %131, %117 : vector<16x264xi1>, vector<16x264xf32>
      %cst_46 = arith.constant dense<0x7F800000> : vector<16xf32>
      %133 = vector.multi_reduction <minimumf>, %132, %cst_46 [1] : vector<16x264xf32> to vector<16xf32>
      %134 = vector.shape_cast %133 : vector<16xf32> to vector<16x1xf32>
      %135 = vector.broadcast %134 : vector<16x1xf32> to vector<16x264xf32>
      %136 = arith.cmpf oeq, %132, %135 : vector<16x264xf32>
      %c2147483647_i32_47 = arith.constant 2147483647 : i32
      %137 = vector.broadcast %c2147483647_i32_47 : i32 to vector<16x264xi32>
      %138 = arith.select %136, %42, %137 : vector<16x264xi1>, vector<16x264xi32>
      %cst_48 = arith.constant dense<2147483647> : vector<16xi32>
      %139 = vector.multi_reduction <minsi>, %138, %cst_48 [1] : vector<16x264xi32> to vector<16xi32>
      %140 = vector.shape_cast %139 : vector<16xi32> to vector<16x1xi32>
      %141 = vector.broadcast %134 : vector<16x1xf32> to vector<16x264xf32>
      %142 = arith.cmpf oeq, %132, %141 : vector<16x264xf32>
      %143 = vector.broadcast %140 : vector<16x1xi32> to vector<16x264xi32>
      %144 = arith.cmpi eq, %42, %143 : vector<16x264xi32>
      %145 = arith.andi %142, %144 : vector<16x264xi1>
      %cst_49 = arith.constant 0x7F800000 : f32
      %146 = vector.broadcast %cst_49 : f32 to vector<16x264xf32>
      %147 = arith.select %145, %146, %132 : vector<16x264xi1>, vector<16x264xf32>
      %cst_50 = arith.constant dense<0x7F800000> : vector<16xf32>
      %148 = vector.multi_reduction <minimumf>, %147, %cst_50 [1] : vector<16x264xf32> to vector<16xf32>
      %149 = vector.shape_cast %148 : vector<16xf32> to vector<16x1xf32>
      %150 = vector.broadcast %149 : vector<16x1xf32> to vector<16x264xf32>
      %151 = arith.cmpf oeq, %147, %150 : vector<16x264xf32>
      %c2147483647_i32_51 = arith.constant 2147483647 : i32
      %152 = vector.broadcast %c2147483647_i32_51 : i32 to vector<16x264xi32>
      %153 = arith.select %151, %42, %152 : vector<16x264xi1>, vector<16x264xi32>
      %cst_52 = arith.constant dense<2147483647> : vector<16xi32>
      %154 = vector.multi_reduction <minsi>, %153, %cst_52 [1] : vector<16x264xi32> to vector<16xi32>
      %155 = vector.shape_cast %154 : vector<16xi32> to vector<16x1xi32>
      %156 = tpu.concatenate %44, %59, %74, %89, %104, %119, %134, %149 in 1 : vector<16x1xf32>, vector<16x1xf32>, vector<16x1xf32>, vector<16x1xf32>, vector<16x1xf32>, vector<16x1xf32>, vector<16x1xf32>, vector<16x1xf32> -> vector<16x8xf32>
      %c0_53 = arith.constant 0 : index
      %c0_54 = arith.constant 0 : index
      %157 = vector.load %arg9[%c0_53, %c0_54] : memref<16x8xf32, #tpu.memory_space<vmem>>, vector<16x8xf32>
      tpu.vector_store %arg9[%c0_53, %c0_54], %156 {strides = array<i32>} : memref<16x8xf32, #tpu.memory_space<vmem>>, vector<16x8xf32>,
      %158 = tpu.concatenate %50, %65, %80, %95, %110, %125, %140, %155 in 1 : vector<16x1xi32>, vector<16x1xi32>, vector<16x1xi32>, vector<16x1xi32>, vector<16x1xi32>, vector<16x1xi32>, vector<16x1xi32>, vector<16x1xi32> -> vector<16x8xi32>
      %c0_55 = arith.constant 0 : index
      %c0_56 = arith.constant 0 : index
      %159 = vector.load %arg10[%c0_55, %c0_56] : memref<16x8xi32, #tpu.memory_space<vmem>>, vector<16x8xi32>
      tpu.vector_store %arg10[%c0_55, %c0_56], %158 {strides = array<i32>} : memref<16x8xi32, #tpu.memory_space<vmem>>, vector<16x8xi32>,
    } else {
    }
    %c0_i32_17 = arith.constant 0 : i32
    %30 = arith.cmpi eq, %arg2, %c0_i32_17 : i32
    %31 = arith.extui %30 : i1 to i32
    %c0_i32_18 = arith.constant 0 : i32
    %32 = arith.cmpi ne, %31, %c0_i32_18 : i32
    scf.if %32 {
      %c0_19 = arith.constant 0 : index
      %c0_20 = arith.constant 0 : index
      %33 = vector.load %arg9[%c0_19, %c0_20] : memref<16x8xf32, #tpu.memory_space<vmem>>, vector<16x8xf32>
      %c0_21 = arith.constant 0 : index
      %c0_22 = arith.constant 0 : index
      %c0_23 = arith.constant 0 : index
      %34 = vector.load %arg7[%c0_21, %c0_22, %c0_23] : memref<1x16x8xf32, #tpu.memory_space<vmem>>, vector<1x16x8xf32>
      %35 = vector.shape_cast %34 : vector<1x16x8xf32> to vector<16x8xf32>
      %36 = vector.shape_cast %33 : vector<16x8xf32> to vector<1x16x8xf32>
      tpu.vector_store %arg7[%c0_21, %c0_22, %c0_23], %36 {strides = array<i32>} : memref<1x16x8xf32, #tpu.memory_space<vmem>>, vector<1x16x8xf32>,
      %c0_24 = arith.constant 0 : index
      %c0_25 = arith.constant 0 : index
      %37 = vector.load %arg10[%c0_24, %c0_25] : memref<16x8xi32, #tpu.memory_space<vmem>>, vector<16x8xi32>
      %c0_26 = arith.constant 0 : index
      %c0_27 = arith.constant 0 : index
      %c0_28 = arith.constant 0 : index
      %38 = vector.load %arg8[%c0_26, %c0_27, %c0_28] : memref<1x16x8xi32, #tpu.memory_space<vmem>>, vector<1x16x8xi32>
      %39 = vector.shape_cast %38 : vector<1x16x8xi32> to vector<16x8xi32>
      %40 = vector.shape_cast %37 : vector<16x8xi32> to vector<1x16x8xi32>
      tpu.vector_store %arg8[%c0_26, %c0_27, %c0_28], %40 {strides = array<i32>} : memref<1x16x8xi32, #tpu.memory_space<vmem>>, vector<1x16x8xi32>,
    } else {
    }
    return
  }
  func.func @transform_0(%arg0: i32, %arg1: i32, %arg2: i32) -> (i32, i32) {
    %c0_i32 = arith.constant 0 : i32
    %c0_i32_0 = arith.constant 0 : i32
    return %arg1, %c0_i32 : i32, i32
  }
  func.func @transform_1(%arg0: i32, %arg1: i32, %arg2: i32) -> (i32, i32) {
    %c0_i32 = arith.constant 0 : i32
    %c0_i32_0 = arith.constant 0 : i32
    return %arg1, %c0_i32 : i32, i32
  }
  func.func @transform_2(%arg0: i32, %arg1: i32, %arg2: i32) -> (i32, i32) {
    %c1_i32 = arith.constant 1 : i32
    %0 = arith.muli %arg0, %c1_i32 : i32
    %1 = arith.addi %0, %arg2 : i32
    %c0_i32 = arith.constant 0 : i32
    %c0_i32_0 = arith.constant 0 : i32
    return %c0_i32, %1 : i32, i32
  }
  func.func @transform_3(%arg0: i32, %arg1: i32, %arg2: i32) -> (i32, i32) {
    %c1_i32 = arith.constant 1 : i32
    %0 = arith.muli %arg0, %c1_i32 : i32
    %1 = arith.addi %0, %arg2 : i32
    %c0_i32 = arith.constant 0 : i32
    %c0_i32_0 = arith.constant 0 : i32
    return %c0_i32, %1 : i32, i32
  }
  func.func @transform_4(%arg0: i32, %arg1: i32, %arg2: i32) -> (i32, i32, i32) {
    %c0_i32 = arith.constant 0 : i32
    %c0_i32_0 = arith.constant 0 : i32
    return %arg0, %arg1, %c0_i32 : i32, i32, i32
  }
  func.func @transform_5(%arg0: i32, %arg1: i32, %arg2: i32) -> (i32, i32, i32) {
    %c0_i32 = arith.constant 0 : i32
    %c0_i32_0 = arith.constant 0 : i32
    return %arg0, %arg1, %c0_i32 : i32, i32, i32
  }
}

</mosaic_0001>

<bundles_post_ra>
// kernel: tpu_custom_call.1
= control target key start
LH: loop header
LB: loop body
LE: loop exit
PB: predicated region body
PF: predicated region fallthrough
CT: control target
= control target key end

     0   :  { %11 = vsyncpa [#allocation5], 0  ;;  %s1068_s21 = smov [#allocation4]   ;;  %s1069_s23 = smov 128   ;;  %s1902_s0 = inlined_call_operand.vmem [shape: bf16[16,128], index: 0, kind: input, shape index: {}]   ;;  %s1903_s1 = inlined_call_operand.vmem [shape: f32[16,1], index: 1, kind: input, shape index: {}]   ;;  %s1904_s2 = inlined_call_operand.hbm [shape: bf16[128,256], index: 2, kind: input, shape index: {}]   ;;  %s1905_s3 = inlined_call_operand.vmem [shape: f32[1,256], index: 3, kind: input, shape index: {}]   ;;  %s1906_s4 = inlined_call_operand.vmem [shape: f32[1,16,8], index: 4, kind: output, shape index: {0}]   ;;  %s1907_s5 = inlined_call_operand.vmem [shape: s32[1,16,8], index: 5, kind: output, shape index: {1}]  }
   0x1   :  { %s24_s20 = sshll.u32 %s1904_s2, 4  ;;  %s26_s22 = sshll.u32 %s1068_s21, 4  ;;  %s25_s20 = int_to_ptr.hbm [resolvable:$true] %s24_s20  ;;  %s27_s22 = int_to_ptr.vmem [resolvable:$true] %s26_s22 }
   0x2   :  { %s1070_s24 = smov 8  }
   0x3   :  { %32 = dma.hbm_to_vmem [thread:$0]  %s25_s20, 2048, %s27_s22, [#allocation5], %s1069_s23, %s1069_s23, %s1070_s24  }
   0x4   :  { %1066 = dma.done.wait [#allocation5], 2048  }
   0x5   :  { %1067 = vsyncadd [#allocation5], 4294965248  ;;  %v1008_v0 = vld [vmem:[#allocation4 + $0x70] sm:$0xf]  ;;  %v1030_v1 = vld [vmem:[#allocation4 + $0x74] sm:$0xf0] }
   0x6   :  { %v1029_v2 = vld [vmem:[#allocation4 + $0x74] sm:$0xf]  ;;  %v1009_v3 = vor.u32 %v1030_v1, %v1008_v0  ;;  %v1010_v4 = vld [vmem:[#allocation4 + $0x78] sm:$0xf0]  ;;  %v1000_v5 = vld [vmem:[#allocation4 + $0x60] sm:$0xf] }
   0x7   :  { %v1028_v6 = vld [vmem:[#allocation4 + $0x64] sm:$0xf0]  ;;  %v1013_v7 = vor.u32 %v1029_v2, %v1010_v4  ;;  %v1027_v8 = vld [vmem:[#allocation4 + $0x64] sm:$0xf]  ;;  %v1002_v9 = vld [vmem:[#allocation4 + $0x68] sm:$0xf0] }
   0x8   :  { %173 = vmatpush.bf16.msra.mxu0 %v1009_v3  ;;  %v1001_v10 = vor.u32 %v1028_v6, %v1000_v5  ;;  %v1005_v11 = vor.u32 %v1027_v8, %v1002_v9  ;;  %v992_v12 = vld [vmem:[#allocation4 + $0x50] sm:$0xf]  ;;  %v1026_v13 = vld [vmem:[#allocation4 + $0x54] sm:$0xf0]  ;;  %v1025_v14 = vld [vmem:[#allocation4 + $0x54] sm:$0xf] }
   0x9   :  { %187 = vmatpush.bf16.msra.mxu1 %v1013_v7  ;;  %v994_v15 = vld [vmem:[#allocation4 + $0x58] sm:$0xf0]  ;;  %v993_v16 = vor.u32 %v1026_v13, %v992_v12  ;;  %v984_v18 = vld [vmem:[#allocation4 + $0x40] sm:$0xf]  ;;  %v1024_v19 = vld [vmem:[#allocation4 + $0x44] sm:$0xf0] }
   0xa   :  { %v997_v17 = vor.u32 %v1025_v14, %v994_v15  ;;  %v1023_v20 = vld [vmem:[#allocation4 + $0x44] sm:$0xf]  ;;  %v986_v21 = vld [vmem:[#allocation4 + $0x48] sm:$0xf0]  ;;  %v985_v22 = vor.u32 %v1024_v19, %v984_v18  ;;  %v1071_v23 = vmov 0   ;;  %vm64_vm0 = vcmask 64512  }
   0xb   :  { %1039 = vset.pattern.permute.xlu0 %v1071_v23  ;;  %v201_v24 = vld [vmem:[%s1903_s1] sm:$0xff]  ;;  %v989_v25 = vor.u32 %v1023_v20, %v986_v21  ;;  %v976_v26 = vld [vmem:[#allocation4 + $0x30] sm:$0xf]  ;;  %v1022_v27 = vld [vmem:[#allocation4 + $0x34] sm:$0xf0]  ;;  %v1072_v28 = vmov inf  }
   0xc   :  { %174 = vmatpush.bf16.msra.mxu0 %v1001_v10  ;;  %65 = vst.msk [vmem:[#allocation2] sm:$0xff] %vm64_vm0, %v1072_v28  ;;  %209 = vperm.xlu0 %1039, %v201_v24   ;;  %v1021_v29 = vld [vmem:[#allocation4 + $0x34] sm:$0xf]  ;;  %v978_v30 = vld [vmem:[#allocation4 + $0x38] sm:$0xf0]  ;;  %v977_v31 = vor.u32 %v1022_v27, %v976_v26  ;;  %v202_v37 = vld [vmem:[%s1903_s1 + $0x8] sm:$0xff] }
   0xd   :  { %188 = vmatpush.bf16.msra.mxu1 %v1005_v11  ;;  %66 = vst.msk [vmem:[#allocation2 + $0x8] sm:$0xff] %vm64_vm0, %v1072_v28  ;;  %v981_v32 = vor.u32 %v1021_v29, %v978_v30  ;;  %v968_v33 = vld [vmem:[#allocation4 + $0x20] sm:$0xf]  ;;  %v1020_v34 = vld [vmem:[#allocation4 + $0x24] sm:$0xf0]  ;;  %v1073_v19 = vmov 0.0  }
   0xe   :  { %67 = vst.msk [vmem:[#allocation3] sm:$0xff] %vm64_vm0, %v1071_v23  ;;  %v1019_v35 = vld [vmem:[#allocation4 + $0x24] sm:$0xf]  ;;  %v970_v36 = vld [vmem:[#allocation4 + $0x28] sm:$0xf0]  ;;  %v969_v38 = vor.u32 %v1020_v34, %v968_v33  ;;  %vm247_vm2 = vcmask 64568  }
   0xf   :  { %68 = vst.msk [vmem:[#allocation3 + $0x8] sm:$0xff] %vm64_vm0, %v1071_v23  ;;  %v973_v39 = vor.u32 %v1019_v35, %v970_v36  ;;  %v960_v40 = vld [vmem:[#allocation4 + $0x10] sm:$0xf]  ;;  %v1018_v41 = vld [vmem:[#allocation4 + $0x14] sm:$0xf0]  ;;  %v1014_v52 = vld [vmem:[%s1902_s0] sm:$0xff] }
  0x10   :  { %175 = vmatpush.bf16.msra.mxu0 %v993_v16  ;;  %v1017_v42 = vld [vmem:[#allocation4 + $0x14] sm:$0xf]  ;;  %v962_v43 = vld [vmem:[#allocation4 + $0x18] sm:$0xf0]  ;;  %v961_v44 = vor.u32 %v1018_v41, %v960_v40  ;;  %v952_v46 = vld [vmem:[#allocation4] sm:$0xf] }
  0x11   :  { %189 = vmatpush.bf16.msra.mxu1 %v997_v17  ;;  %v965_v45 = vor.u32 %v1017_v42, %v962_v43  ;;  %v1016_v47 = vld [vmem:[#allocation4 + $0x4] sm:$0xf0]  ;;  %v1015_v48 = vld [vmem:[#allocation4 + $0x4] sm:$0xf]  ;;  %v954_v49 = vld [vmem:[#allocation4 + $0x8] sm:$0xf0] }
  0x12   :  { %v953_v50 = vor.u32 %v1016_v47, %v952_v46  ;;  %v957_v51 = vor.u32 %v1015_v48, %v954_v49  ;;  %v221_v53 = vld [vmem:[%s1905_s3] sm:$0x3] }
  0x13   :  { %v223_v58 = vperm.slane %v221_v53, 0  ;;  %v224_v60 = vperm.slane %v221_v53, 1  ;;  %v241_v17 = vld [vmem:[#allocation2] sm:$0xff] }
  0x14   :  { %176 = vmatpush.bf16.msra.mxu0 %v985_v22  ;;  %214 = vperm.xlu0 %1039, %v202_v37   ;;  %v242_v18 = vld [vmem:[#allocation2 + $0x8] sm:$0xff] }
  0x15   :  { %190 = vmatpush.bf16.msra.mxu1 %v989_v25 }
  0x18   :  { %177 = vmatpush.bf16.msra.mxu0 %v977_v31 }
  0x19   :  { %191 = vmatpush.bf16.msra.mxu1 %v981_v32 }
  0x1c   :  { %178 = vmatpush.bf16.msra.mxu0 %v969_v38 }
  0x1d   :  { %192 = vmatpush.bf16.msra.mxu1 %v973_v39 }
  0x20   :  { %179 = vmatpush.bf16.msra.mxu0 %v961_v44 }
  0x21   :  { %193 = vmatpush.bf16.msra.mxu1 %v965_v45 }
  0x24   :  { %180 = vmatpush.bf16.msra.mxu0 %v953_v50 }
  0x25   :  { %194 = vmatpush.bf16.msra.mxu1 %v957_v51 }
  0x27   :  { %181 = vmatmul.bf16.vlgmr.msra.gmra.mxu0 %v1014_v52 }
  0x28   :  { %195 = vmatmul.bf16.vlgmr.msra.gmra.mxu1 %v1014_v52 }
  0x7e   :  { %v210_v54 = vpop.permute.xlu0 %209 }
  0x86   :  { %v215_v6 = vpop.permute.xlu0 %214 }
  0xa4   :  { %v182_v55 = vpop.f32.mrf.mxu0 }
  0xa5   :  { %v203_v56 = vmul.f32 2.0, %v182_v55  ;;  %v196_v57 = vpop.f32.mrf.mxu1 }
  0xa6   :  { %v204_v59 = vmul.f32 2.0, %v196_v57 }
  0xa7   :  { %v217_v61 = vsub.f32 %v210_v54, %v203_v56 }
  0xa8   :  { %v218_v62 = vsub.f32 %v210_v54, %v204_v59 }
  0xa9   :  { %v227_v63 = vadd.f32 %v223_v58, %v217_v61 }
  0xaa   :  { %v228_v0 = vadd.f32 %v224_v60, %v218_v62 }
  0xab   :  { %v1123_v1 = vmax.f32 %v227_v63, 0.0 }
  0xac   :  { %v184_v2 = vpop.f32.mrf.mxu0  ;;  %v1125_v3 = vmax.f32 %v228_v0, 0.0 }
  0xad   :  { %v205_v4 = vmul.f32 2.0, %v184_v2  ;;  %v198_v5 = vpop.f32.mrf.mxu1 }
  0xae   :  { %v206_v7 = vmul.f32 2.0, %v198_v5  ;;  %v235_v8 = vmin.f32 %v1123_v1, %v1125_v3 }
  0xaf   :  { %v219_v9 = vsub.f32 %v215_v6, %v205_v4 }
  0xb0   :  { %v220_v10 = vsub.f32 %v215_v6, %v206_v7  ;;  %236 = vmin.xlane.f32.xlu1 %v235_v8 }
  0xb1   :  { %v229_v11 = vadd.f32 %v223_v58, %v219_v9 }
  0xb2   :  { %v230_v12 = vadd.f32 %v224_v60, %v220_v10 }
  0xb3   :  { %v1129_v13 = vmax.f32 %v229_v11, 0.0 }
  0xb4   :  { %v1131_v14 = vmax.f32 %v230_v12, 0.0 }
  0xb6   :  { %v238_v15 = vmin.f32 %v1129_v13, %v1131_v14 }
  0xb8   :  { %239 = vmin.xlane.f32.xlu1 %v238_v15 }
 0x123   :  { %v237_v16 = vpop.xlane.xlu1 %236 }
 0x124   :  { %vm243_vm1 = vcmp.lt.f32.partialorder %v237_v16, %v241_v17 }
 0x125   :  { %v245_v20 = vsel %vm243_vm1, 1.0, %v1073_v19 }
 0x126   :  { %v248_v23 = vsel %vm247_vm2, %v245_v20, -inf }
 0x12b   :  { %v240_v21 = vpop.xlane.xlu1 %239 }
 0x12c   :  { %vm244_vm3 = vcmp.lt.f32.partialorder %v240_v21, %v242_v18 }
 0x12d   :  { %v246_v22 = vsel %vm244_vm3, 1.0, %v1073_v19 }
 0x12e   :  { %v249_v24 = vsel %vm247_vm2, %v246_v22, -inf }
 0x12f   :  { %v250_v25 = vmax.f32 %v248_v23, %v249_v24 }
 0x131   :  { %251 = vmax.xlane.f32.xlu2 %v250_v25 }
 0x1a4   :  { %v252_v26 = vpop.xlane.xlu2 %251 }
 0x1a5   :  { %v253_v27 = vrot.slane %v252_v26, 4 }
 0x1a7   :  { %v254_v28 = vmax.f32 %v252_v26, %v253_v27 }
 0x1a9   :  { %v255_v29 = vrot.slane %v254_v28, 2 }
 0x1ab   :  { %v256_v30 = vmax.f32 %v254_v28, %v255_v29 }
 0x1ad   :  { %v257_v31 = vrot.slane %v256_v30, 1 }
 0x1af   :  { %v258_v32 = vmax.f32 %v256_v30, %v257_v31 }
 0x1b1   :  { %1031 = vpush %v258_v32 }
 0x1e2   :  { %s1032_s0 = spop %1031 }
 0x1e3   :  { %p260_p0 = scmp.gt.f32.partialorder %s1032_s0, 0.0 }
 0x1e4   :  { %v1135_v33 = vld [vmem:[#allocation2] sm:$0xff] (%p260_p0)  ;;  %v1137_v34 = vld [vmem:[#allocation2 + $0x8] sm:$0xff] (%p260_p0)  ;;  %v264_v41 = vlaneseq (%p260_p0)  ;;  %v1149_v43 = vld [vmem:[#allocation3] sm:$0xff] (%p260_p0) }
 0x1e5   :  { %263 = sbr.rel (!%p260_p0) target bundleno = 3483 (0xd9b), region = 29  ;;  %v277_v35 = vsel (%p260_p0), %vm64_vm0, %v1135_v33, inf  ;;  %v282_v37 = vsel (%p260_p0), %vm64_vm0, %v1137_v34, inf  ;;  %v1175_v51 = vld [vmem:[#allocation3 + $0x8] sm:$0xff] (%p260_p0) }
 0x1e6   :  { %v278_v36 = vmin.f32 (%p260_p0), %v1123_v1, %v277_v35  ;;  %v283_v39 = vmin.f32 (%p260_p0), %v1129_v13, %v282_v37  ;;  %v1147_v42 = vand.u32 (%p260_p0), 127, %v264_v41 }
 0x1e8   :  { %v279_v38 = vmin.f32 (%p260_p0), %v278_v36, %v1125_v3  ;;  %v284_v40 = vmin.f32 (%p260_p0), %v283_v39, %v1131_v14  ;;  %v1158_v45 = vadd.s32 (%p260_p0), 128, %v1147_v42 }
 0x1ea   :  { %280 = vmin.xlane.f32.xlu0 %v279_v38 }
 0x1f2   :  { %285 = vmin.xlane.f32.xlu0 %v284_v40 }
 0x25d   :  { %v1151_v44 = vpop.xlane.xlu0 %280 }
 0x25e   :  { %vm287_vm4 = vcmp.eq.f32.partialorder %v1123_v1, %v1151_v44  ;;  %vm289_vm5 = vcmp.eq.f32.partialorder %v1135_v33, %v1151_v44  ;;  %vm288_vm6 = vcmp.eq.f32.partialorder %v1125_v3, %v1151_v44 }
 0x25f   :  { %v293_v46 = vsel %vm287_vm4, %v1147_v42, 2147483647  ;;  %v295_v47 = vsel %vm289_vm5, %v1149_v43, 2147483647  ;;  %v294_v49 = vsel %vm288_vm6, %v1158_v45, 2147483647 }
 0x260   :  { %v299_v48 = vsel %vm64_vm0, %v295_v47, 2147483647 }
 0x261   :  { %vm300_vm7 = vcmp.lt.s32.totalorder %v293_v46, %v299_v48 }
 0x262   :  { %v301_v50 = vsel %vm300_vm7, %v293_v46, %v299_v48 }
 0x263   :  { %vm302_vm8 = vcmp.lt.s32.totalorder %v301_v50, %v294_v49 }
 0x264   :  { %v303_v52 = vsel %vm302_vm8, %v301_v50, %v294_v49 }
 0x265   :  { %v1177_v53 = vpop.xlane.xlu0 %285  ;;  %v305_v54 = vshra.s32 %v303_v52, 16  ;;  %v304_v0 = vand.u32 65535, %v303_v52 }
 0x266   :  { %vm290_vm9 = vcmp.eq.f32.partialorder %v1129_v13, %v1177_v53  ;;  %vm292_vm10 = vcmp.eq.f32.partialorder %v1137_v34, %v1177_v53  ;;  %vm291_vm11 = vcmp.eq.f32.partialorder %v1131_v14, %v1177_v53 }
 0x267   :  { %v296_v55 = vsel %vm290_vm9, %v1147_v42, 2147483647  ;;  %v298_v56 = vsel %vm292_vm10, %v1175_v51, 2147483647  ;;  %v307_v57 = vcvt.s32.f32 %v305_v54  ;;  %v297_v59 = vsel %vm291_vm11, %v1158_v45, 2147483647 }
 0x268   :  { %v318_v58 = vsel %vm64_vm0, %v298_v56, 2147483647  ;;  %v306_v4 = vcvt.s32.f32 %v304_v0 }
 0x269   :  { %308 = vmin.xlane.f32.xlu1 %v307_v57  ;;  %vm319_vm12 = vcmp.lt.s32.totalorder %v296_v55, %v318_v58 }
 0x26a   :  { %v320_v60 = vsel %vm319_vm12, %v296_v55, %v318_v58 }
 0x26b   :  { %vm321_vm13 = vcmp.lt.s32.totalorder %v320_v60, %v297_v59 }
 0x26c   :  { %v322_v61 = vsel %vm321_vm13, %v320_v60, %v297_v59 }
 0x26d   :  { %v324_v62 = vshra.s32 %v322_v61, 16  ;;  %v323_v6 = vand.u32 65535, %v322_v61 }
 0x26f   :  { %v326_v63 = vcvt.s32.f32 %v324_v62  ;;  %v325_v8 = vcvt.s32.f32 %v323_v6 }
 0x271   :  { %327 = vmin.xlane.f32.xlu1 %v326_v63 }
 0x2dc   :  { %v309_v2 = vpop.xlane.xlu1 %308 }
 0x2dd   :  { %vm310_vm14 = vcmp.eq.f32.partialorder %v307_v57, %v309_v2  ;;  %v315_v10 = vcvt.f32.s32 %v309_v2 }
 0x2de   :  { %v311_v5 = vsel %vm310_vm14, %v306_v4, inf }
 0x2df   :  { %312 = vmin.xlane.f32.xlu2 %v311_v5  ;;  %v316_v12 = vshll.u32 %v315_v10, 16 }
 0x2e4   :  { %v328_v7 = vpop.xlane.xlu1 %327 }
 0x2e5   :  { %vm329_vm15 = vcmp.eq.f32.partialorder %v326_v63, %v328_v7  ;;  %v334_v17 = vcvt.f32.s32 %v328_v7 }
 0x2e6   :  { %v330_v9 = vsel %vm329_vm15, %v325_v8, inf }
 0x2e7   :  { %331 = vmin.xlane.f32.xlu2 %v330_v9  ;;  %v335_v20 = vshll.u32 %v334_v17, 16 }
 0x352   :  { %v313_v11 = vpop.xlane.xlu2 %312 }
 0x353   :  { %v314_v15 = vcvt.f32.s32 %v313_v11 }
 0x355   :  { %v1198_v16 = vadd.s32 %v316_v12, %v314_v15 }
 0x357   :  { %vm337_vm1 = vcmp.eq.s32.totalorder %v1147_v42, %v1198_v16  ;;  %vm339_vm2 = vcmp.eq.s32.totalorder %v1149_v43, %v1198_v16  ;;  %vm338_vm3 = vcmp.eq.s32.totalorder %v1158_v45, %v1198_v16 }
 0x358   :  { %vm343_vm7 = vmand %vm287_vm4, %vm337_vm1 }
 0x359   :  { %vm345_vm8 = vmand %vm289_vm5, %vm339_vm2  ;;  %v1213_v19 = vsel %vm343_vm7, inf, %v1123_v1 }
 0x35a   :  { %v332_v18 = vpop.xlane.xlu2 %331  ;;  %vm344_vm12 = vmand %vm288_vm6, %vm338_vm3  ;;  %v1219_v22 = vsel %vm345_vm8, inf, %v1135_v33 }
 0x35b   :  { %v333_v21 = vcvt.f32.s32 %v332_v18  ;;  %v355_v23 = vsel %vm64_vm0, %v1219_v22, inf  ;;  %v1227_v26 = vsel %vm344_vm12, inf, %v1125_v3 }
 0x35c   :  { %v356_v25 = vmin.f32 %v1213_v19, %v355_v23 }
 0x35d   :  { %v1223_v24 = vadd.s32 %v335_v20, %v333_v21 }
 0x35e   :  { %v357_v1 = vmin.f32 %v356_v25, %v1227_v26 }
 0x35f   :  { %vm340_vm4 = vcmp.eq.s32.totalorder %v1147_v42, %v1223_v24  ;;  %vm342_vm5 = vcmp.eq.s32.totalorder %v1175_v51, %v1223_v24  ;;  %vm341_vm6 = vcmp.eq.s32.totalorder %v1158_v45, %v1223_v24 }
 0x360   :  { %vm346_vm13 = vmand %vm290_vm9, %vm340_vm4  ;;  %358 = vmin.xlane.f32.xlu0 %v357_v1 }
 0x361   :  { %vm348_vm14 = vmand %vm292_vm10, %vm342_vm5  ;;  %v1243_v3 = vsel %vm346_vm13, inf, %v1129_v13 }
 0x362   :  { %vm347_vm15 = vmand %vm291_vm11, %vm341_vm6  ;;  %v1249_v27 = vsel %vm348_vm14, inf, %v1137_v34 }
 0x363   :  { %v360_v28 = vsel %vm64_vm0, %v1249_v27, inf  ;;  %v1255_v30 = vsel %vm347_vm15, inf, %v1131_v14 }
 0x364   :  { %v361_v29 = vmin.f32 %v1243_v3, %v360_v28 }
 0x366   :  { %v362_v31 = vmin.f32 %v361_v29, %v1255_v30 }
 0x368   :  { %363 = vmin.xlane.f32.xlu1 %v362_v31 }
 0x3d3   :  { %v1258_v13 = vpop.xlane.xlu0 %358 }
 0x3d4   :  { %vm365_vm9 = vcmp.eq.f32.partialorder %v1213_v19, %v1258_v13  ;;  %vm367_vm10 = vcmp.eq.f32.partialorder %v1219_v22, %v1258_v13  ;;  %vm366_vm11 = vcmp.eq.f32.partialorder %v1227_v26, %v1258_v13 }
 0x3d5   :  { %v371_v14 = vsel %vm365_vm9, %v1147_v42, 2147483647  ;;  %v373_v32 = vsel %vm367_vm10, %v1149_v43, 2147483647  ;;  %v372_v34 = vsel %vm366_vm11, %v1158_v45, 2147483647 }
 0x3d6   :  { %v377_v33 = vsel %vm64_vm0, %v373_v32, 2147483647 }
 0x3d7   :  { %vm378_vm1 = vcmp.lt.s32.totalorder %v371_v14, %v377_v33 }
 0x3d8   :  { %v379_v35 = vsel %vm378_vm1, %v371_v14, %v377_v33 }
 0x3d9   :  { %vm380_vm2 = vcmp.lt.s32.totalorder %v379_v35, %v372_v34 }
 0x3da   :  { %v381_v36 = vsel %vm380_vm2, %v379_v35, %v372_v34 }
 0x3db   :  { %v1279_v37 = vpop.xlane.xlu1 %363  ;;  %v383_v38 = vshra.s32 %v381_v36, 16  ;;  %v382_v54 = vand.u32 65535, %v381_v36 }
 0x3dc   :  { %vm368_vm3 = vcmp.eq.f32.partialorder %v1243_v3, %v1279_v37  ;;  %vm370_vm7 = vcmp.eq.f32.partialorder %v1249_v27, %v1279_v37  ;;  %vm369_vm8 = vcmp.eq.f32.partialorder %v1255_v30, %v1279_v37 }
 0x3dd   :  { %v374_v39 = vsel %vm368_vm3, %v1147_v42, 2147483647  ;;  %v376_v40 = vsel %vm370_vm7, %v1175_v51, 2147483647  ;;  %v385_v41 = vcvt.s32.f32 %v383_v38  ;;  %v375_v47 = vsel %vm369_vm8, %v1158_v45, 2147483647 }
 0x3de   :  { %v396_v46 = vsel %vm64_vm0, %v376_v40, 2147483647  ;;  %v384_v56 = vcvt.s32.f32 %v382_v54 }
 0x3df   :  { %386 = vmin.xlane.f32.xlu2 %v385_v41  ;;  %vm397_vm12 = vcmp.lt.s32.totalorder %v374_v39, %v396_v46 }
 0x3e0   :  { %v398_v48 = vsel %vm397_vm12, %v374_v39, %v396_v46 }
 0x3e1   :  { %vm399_vm4 = vcmp.lt.s32.totalorder %v398_v48, %v375_v47 }
 0x3e2   :  { %v400_v49 = vsel %vm399_vm4, %v398_v48, %v375_v47 }
 0x3e3   :  { %v402_v50 = vshra.s32 %v400_v49, 16  ;;  %v401_v58 = vand.u32 65535, %v400_v49 }
 0x3e5   :  { %v404_v52 = vcvt.s32.f32 %v402_v50  ;;  %v403_v60 = vcvt.s32.f32 %v401_v58 }
 0x3e7   :  { %405 = vmin.xlane.f32.xlu0 %v404_v52 }
 0x452   :  { %v387_v55 = vpop.xlane.xlu2 %386 }
 0x453   :  { %vm388_vm5 = vcmp.eq.f32.partialorder %v385_v41, %v387_v55  ;;  %v393_v62 = vcvt.f32.s32 %v387_v55 }
 0x454   :  { %v389_v57 = vsel %vm388_vm5, %v384_v56, inf }
 0x455   :  { %390 = vmin.xlane.f32.xlu1 %v389_v57  ;;  %v394_v0 = vshll.u32 %v393_v62, 16 }
 0x45a   :  { %v406_v59 = vpop.xlane.xlu0 %405 }
 0x45b   :  { %vm407_vm6 = vcmp.eq.f32.partialorder %v404_v52, %v406_v59  ;;  %v412_v5 = vcvt.f32.s32 %v406_v59 }
 0x45c   :  { %v408_v61 = vsel %vm407_vm6, %v403_v60, inf }
 0x45d   :  { %409 = vmin.xlane.f32.xlu2 %v408_v61  ;;  %v413_v8 = vshll.u32 %v412_v5, 16 }
 0x4c8   :  { %v391_v63 = vpop.xlane.xlu1 %390 }
 0x4c9   :  { %v392_v2 = vcvt.f32.s32 %v391_v63 }
 0x4cb   :  { %v1300_v4 = vadd.s32 %v394_v0, %v392_v2 }
 0x4cd   :  { %vm415_vm13 = vcmp.eq.s32.totalorder %v1147_v42, %v1300_v4  ;;  %vm417_vm14 = vcmp.eq.s32.totalorder %v1149_v43, %v1300_v4  ;;  %vm416_vm15 = vcmp.eq.s32.totalorder %v1158_v45, %v1300_v4 }
 0x4ce   :  { %vm421_vm1 = vmand %vm365_vm9, %vm415_vm13 }
 0x4cf   :  { %vm423_vm2 = vmand %vm367_vm10, %vm417_vm14  ;;  %v1315_v7 = vsel %vm421_vm1, inf, %v1213_v19 }
 0x4d0   :  { %v410_v6 = vpop.xlane.xlu2 %409  ;;  %vm422_vm12 = vmand %vm366_vm11, %vm416_vm15  ;;  %v1321_v10 = vsel %vm423_vm2, inf, %v1219_v22 }
 0x4d1   :  { %v411_v9 = vcvt.f32.s32 %v410_v6  ;;  %v433_v11 = vsel %vm64_vm0, %v1321_v10, inf  ;;  %v1329_v17 = vsel %vm422_vm12, inf, %v1227_v26 }
 0x4d2   :  { %v434_v15 = vmin.f32 %v1315_v7, %v433_v11 }
 0x4d3   :  { %v1325_v12 = vadd.s32 %v413_v8, %v411_v9 }
 0x4d4   :  { %v435_v18 = vmin.f32 %v434_v15, %v1329_v17 }
 0x4d5   :  { %vm418_vm9 = vcmp.eq.s32.totalorder %v1147_v42, %v1325_v12  ;;  %vm419_vm10 = vcmp.eq.s32.totalorder %v1158_v45, %v1325_v12  ;;  %vm420_vm11 = vcmp.eq.s32.totalorder %v1175_v51, %v1325_v12 }
 0x4d6   :  { %vm424_vm4 = vmand %vm368_vm3, %vm418_vm9  ;;  %436 = vmin.xlane.f32.xlu0 %v435_v18 }
 0x4d7   :  { %vm426_vm5 = vmand %vm370_vm7, %vm420_vm11  ;;  %v1345_v19 = vsel %vm424_vm4, inf, %v1243_v3  ;;  %vm883_vm4 = vcmask 7168  }
 0x4d8   :  { %vm425_vm6 = vmand %vm369_vm8, %vm419_vm10  ;;  %v1351_v20 = vsel %vm426_vm5, inf, %v1249_v27  ;;  %v906_v61 = vsel %vm883_vm4, %v1198_v16, %v1300_v4  ;;  %vm886_vm5 = vcmask 15360  }
 0x4d9   :  { %v438_v21 = vsel %vm64_vm0, %v1351_v20, inf  ;;  %v1357_v23 = vsel %vm425_vm6, inf, %v1255_v30 }
 0x4da   :  { %v439_v22 = vmin.f32 %v1345_v19, %v438_v21 }
 0x4dc   :  { %v440_v25 = vmin.f32 %v439_v22, %v1357_v23 }
 0x4de   :  { %441 = vmin.xlane.f32.xlu1 %v440_v25 }
 0x549   :  { %v1360_v26 = vpop.xlane.xlu0 %436 }
 0x54a   :  { %vm443_vm3 = vcmp.eq.f32.partialorder %v1315_v7, %v1360_v26  ;;  %vm445_vm7 = vcmp.eq.f32.partialorder %v1321_v10, %v1360_v26  ;;  %vm444_vm8 = vcmp.eq.f32.partialorder %v1329_v17, %v1360_v26 }
 0x54b   :  { %v449_v1 = vsel %vm443_vm3, %v1147_v42, 2147483647  ;;  %v451_v3 = vsel %vm445_vm7, %v1149_v43, 2147483647  ;;  %v450_v28 = vsel %vm444_vm8, %v1158_v45, 2147483647 }
 0x54c   :  { %v455_v27 = vsel %vm64_vm0, %v451_v3, 2147483647 }
 0x54d   :  { %vm456_vm13 = vcmp.lt.s32.totalorder %v449_v1, %v455_v27 }
 0x54e   :  { %v457_v29 = vsel %vm456_vm13, %v449_v1, %v455_v27 }
 0x54f   :  { %vm458_vm14 = vcmp.lt.s32.totalorder %v457_v29, %v450_v28 }
 0x550   :  { %v459_v30 = vsel %vm458_vm14, %v457_v29, %v450_v28 }
 0x551   :  { %v1381_v31 = vpop.xlane.xlu1 %441  ;;  %v461_v14 = vshra.s32 %v459_v30, 16  ;;  %v460_v46 = vand.u32 65535, %v459_v30 }
 0x552   :  { %vm446_vm15 = vcmp.eq.f32.partialorder %v1345_v19, %v1381_v31  ;;  %vm448_vm1 = vcmp.eq.f32.partialorder %v1351_v20, %v1381_v31  ;;  %vm447_vm2 = vcmp.eq.f32.partialorder %v1357_v23, %v1381_v31 }
 0x553   :  { %v452_v32 = vsel %vm446_vm15, %v1147_v42, 2147483647  ;;  %v454_v33 = vsel %vm448_vm1, %v1175_v51, 2147483647  ;;  %v463_v34 = vcvt.s32.f32 %v461_v14  ;;  %v453_v36 = vsel %vm447_vm2, %v1158_v45, 2147483647 }
 0x554   :  { %v474_v35 = vsel %vm64_vm0, %v454_v33, 2147483647  ;;  %v462_v48 = vcvt.s32.f32 %v460_v46 }
 0x555   :  { %464 = vmin.xlane.f32.xlu2 %v463_v34  ;;  %vm475_vm12 = vcmp.lt.s32.totalorder %v452_v32, %v474_v35 }
 0x556   :  { %v476_v38 = vsel %vm475_vm12, %v452_v32, %v474_v35 }
 0x557   :  { %vm477_vm9 = vcmp.lt.s32.totalorder %v476_v38, %v453_v36 }
 0x558   :  { %v478_v39 = vsel %vm477_vm9, %v476_v38, %v453_v36 }
 0x559   :  { %v480_v40 = vshra.s32 %v478_v39, 16  ;;  %v479_v50 = vand.u32 65535, %v478_v39 }
 0x55b   :  { %v482_v41 = vcvt.s32.f32 %v480_v40  ;;  %v481_v54 = vcvt.s32.f32 %v479_v50 }
 0x55d   :  { %483 = vmin.xlane.f32.xlu0 %v482_v41 }
 0x5c8   :  { %v465_v47 = vpop.xlane.xlu2 %464 }
 0x5c9   :  { %vm466_vm10 = vcmp.eq.f32.partialorder %v463_v34, %v465_v47  ;;  %v471_v56 = vcvt.f32.s32 %v465_v47 }
 0x5ca   :  { %v467_v49 = vsel %vm466_vm10, %v462_v48, inf }
 0x5cb   :  { %468 = vmin.xlane.f32.xlu1 %v467_v49  ;;  %v472_v58 = vshll.u32 %v471_v56, 16 }
 0x5d0   :  { %v484_v52 = vpop.xlane.xlu0 %483 }
 0x5d1   :  { %vm485_vm11 = vcmp.eq.f32.partialorder %v482_v41, %v484_v52  ;;  %v490_v62 = vcvt.f32.s32 %v484_v52 }
 0x5d2   :  { %v486_v55 = vsel %vm485_vm11, %v481_v54, inf }
 0x5d3   :  { %487 = vmin.xlane.f32.xlu2 %v486_v55  ;;  %v491_v2 = vshll.u32 %v490_v62, 16 }
 0x63e   :  { %v469_v57 = vpop.xlane.xlu1 %468 }
 0x63f   :  { %v470_v59 = vcvt.f32.s32 %v469_v57 }
 0x641   :  { %v473_v60 = vadd.s32 %v472_v58, %v470_v59 }
 0x643   :  { %v1406_v63 = vsel %vm886_vm5, %v906_v61, %v473_v60  ;;  %vm493_vm6 = vcmp.eq.s32.totalorder %v1147_v42, %v473_v60  ;;  %vm495_vm13 = vcmp.eq.s32.totalorder %v1149_v43, %v473_v60  ;;  %vm494_vm14 = vcmp.eq.s32.totalorder %v1158_v45, %v473_v60 }
 0x644   :  { %vm499_vm12 = vmand %vm443_vm3, %vm493_vm6 }
 0x645   :  { %vm501_vm9 = vmand %vm445_vm7, %vm495_vm13  ;;  %v1418_v16 = vsel %vm499_vm12, inf, %v1315_v7  ;;  %v907_v7 = vsel %vm883_vm4, %v1223_v24, %v1325_v12 }
 0x646   :  { %v488_v0 = vpop.xlane.xlu2 %487  ;;  %vm500_vm10 = vmand %vm444_vm8, %vm494_vm14  ;;  %v1424_v5 = vsel %vm501_vm9, inf, %v1321_v10 }
 0x647   :  { %v489_v4 = vcvt.f32.s32 %v488_v0  ;;  %v511_v6 = vsel %vm64_vm0, %v1424_v5, inf  ;;  %v1433_v11 = vsel %vm500_vm10, inf, %v1329_v17 }
 0x648   :  { %v512_v9 = vmin.f32 %v1418_v16, %v511_v6 }
 0x649   :  { %v492_v8 = vadd.s32 %v491_v2, %v489_v4 }
 0x64a   :  { %v513_v18 = vmin.f32 %v512_v9, %v1433_v11 }
 0x64b   :  { %v1436_v15 = vsel %vm886_vm5, %v907_v7, %v492_v8  ;;  %vm496_vm3 = vcmp.eq.s32.totalorder %v1147_v42, %v492_v8  ;;  %vm497_vm7 = vcmp.eq.s32.totalorder %v1158_v45, %v492_v8  ;;  %vm498_vm8 = vcmp.eq.s32.totalorder %v1175_v51, %v492_v8 }
 0x64c   :  { %vm502_vm11 = vmand %vm446_vm15, %vm496_vm3  ;;  %514 = vmin.xlane.f32.xlu0 %v513_v18 }
 0x64d   :  { %vm504_vm6 = vmand %vm448_vm1, %vm498_vm8  ;;  %v1449_v24 = vsel %vm502_vm11, inf, %v1345_v19 }
 0x64e   :  { %vm503_vm13 = vmand %vm447_vm2, %vm497_vm7  ;;  %v1455_v10 = vsel %vm504_vm6, inf, %v1351_v20 }
 0x64f   :  { %v516_v12 = vsel %vm64_vm0, %v1455_v10, inf  ;;  %v1461_v21 = vsel %vm503_vm13, inf, %v1357_v23  ;;  %vm1908_vm13 = vcmask 23552  }
 0x650   :  { %v517_v17 = vmin.f32 %v1449_v24, %v516_v12 }
 0x652   :  { %v518_v22 = vmin.f32 %v517_v17, %v1461_v21 }
 0x654   :  { %519 = vmin.xlane.f32.xlu1 %v518_v22 }
 0x6bf   :  { %v1464_v19 = vpop.xlane.xlu0 %514 }
 0x6c0   :  { %vm521_vm15 = vcmp.eq.f32.partialorder %v1418_v16, %v1464_v19  ;;  %vm523_vm1 = vcmp.eq.f32.partialorder %v1424_v5, %v1464_v19  ;;  %vm522_vm2 = vcmp.eq.f32.partialorder %v1433_v11, %v1464_v19 }
 0x6c1   :  { %v527_v20 = vsel %vm521_vm15, %v1147_v42, 2147483647  ;;  %v529_v23 = vsel %vm523_vm1, %v1149_v43, 2147483647  ;;  %v528_v1 = vsel %vm522_vm2, %v1158_v45, 2147483647 }
 0x6c2   :  { %v533_v25 = vsel %vm64_vm0, %v529_v23, 2147483647 }
 0x6c3   :  { %vm534_vm14 = vcmp.lt.s32.totalorder %v527_v20, %v533_v25 }
 0x6c4   :  { %v535_v3 = vsel %vm534_vm14, %v527_v20, %v533_v25 }
 0x6c5   :  { %vm536_vm12 = vcmp.lt.s32.totalorder %v535_v3, %v528_v1 }
 0x6c6   :  { %v537_v27 = vsel %vm536_vm12, %v535_v3, %v528_v1 }
 0x6c7   :  { %v1485_v28 = vpop.xlane.xlu1 %519  ;;  %v539_v29 = vshra.s32 %v537_v27, 16  ;;  %v538_v40 = vand.u32 65535, %v537_v27 }
 0x6c8   :  { %vm524_vm9 = vcmp.eq.f32.partialorder %v1449_v24, %v1485_v28  ;;  %vm526_vm10 = vcmp.eq.f32.partialorder %v1455_v10, %v1485_v28  ;;  %vm525_vm3 = vcmp.eq.f32.partialorder %v1461_v21, %v1485_v28 }
 0x6c9   :  { %v530_v30 = vsel %vm524_vm9, %v1147_v42, 2147483647  ;;  %v532_v14 = vsel %vm526_vm10, %v1175_v51, 2147483647  ;;  %v541_v32 = vcvt.s32.f32 %v539_v29  ;;  %v531_v34 = vsel %vm525_vm3, %v1158_v45, 2147483647 }
 0x6ca   :  { %v552_v33 = vsel %vm64_vm0, %v532_v14, 2147483647  ;;  %v540_v46 = vcvt.s32.f32 %v538_v40 }
 0x6cb   :  { %542 = vmin.xlane.f32.xlu2 %v541_v32  ;;  %vm553_vm7 = vcmp.lt.s32.totalorder %v530_v30, %v552_v33 }
 0x6cc   :  { %v554_v35 = vsel %vm553_vm7, %v530_v30, %v552_v33 }
 0x6cd   :  { %vm555_vm8 = vcmp.lt.s32.totalorder %v554_v35, %v531_v34 }
 0x6ce   :  { %v556_v36 = vsel %vm555_vm8, %v554_v35, %v531_v34 }
 0x6cf   :  { %v558_v38 = vshra.s32 %v556_v36, 16  ;;  %v557_v48 = vand.u32 65535, %v556_v36 }
 0x6d1   :  { %v560_v39 = vcvt.s32.f32 %v558_v38  ;;  %v559_v50 = vcvt.s32.f32 %v557_v48 }
 0x6d3   :  { %561 = vmin.xlane.f32.xlu0 %v560_v39 }
 0x73e   :  { %v543_v41 = vpop.xlane.xlu2 %542 }
 0x73f   :  { %vm544_vm11 = vcmp.eq.f32.partialorder %v541_v32, %v543_v41  ;;  %v549_v54 = vcvt.f32.s32 %v543_v41 }
 0x740   :  { %v545_v47 = vsel %vm544_vm11, %v540_v46, inf }
 0x741   :  { %546 = vmin.xlane.f32.xlu1 %v545_v47  ;;  %v550_v56 = vshll.u32 %v549_v54, 16 }
 0x746   :  { %v562_v49 = vpop.xlane.xlu0 %561 }
 0x747   :  { %vm563_vm6 = vcmp.eq.f32.partialorder %v560_v39, %v562_v49  ;;  %v568_v59 = vcvt.f32.s32 %v562_v49 }
 0x748   :  { %v564_v52 = vsel %vm563_vm6, %v559_v50, inf }
 0x749   :  { %565 = vmin.xlane.f32.xlu2 %v564_v52 }
 0x7b4   :  { %v547_v55 = vpop.xlane.xlu1 %546 }
 0x7b5   :  { %v548_v57 = vcvt.f32.s32 %v547_v55 }
 0x7b7   :  { %v551_v58 = vadd.s32 %v550_v56, %v548_v57 }
 0x7b9   :  { %v1508_v60 = vsel %vm1908_vm13, %v1406_v63, %v551_v58  ;;  %vm571_vm14 = vcmp.eq.s32.totalorder %v1147_v42, %v551_v58  ;;  %vm573_vm12 = vcmp.eq.s32.totalorder %v1149_v43, %v551_v58  ;;  %vm572_vm7 = vcmp.eq.s32.totalorder %v1158_v45, %v551_v58 }
 0x7ba   :  { %vm577_vm8 = vmand %vm521_vm15, %vm571_vm14  ;;  %v569_v63 = vshll.u32 %v568_v59, 16 }
 0x7bb   :  { %vm579_vm11 = vmand %vm523_vm1, %vm573_vm12  ;;  %v1520_v62 = vsel %vm577_vm8, inf, %v1418_v16 }
 0x7bc   :  { %v566_v61 = vpop.xlane.xlu2 %565  ;;  %vm578_vm6 = vmand %vm522_vm2, %vm572_vm7  ;;  %v1526_v2 = vsel %vm579_vm11, inf, %v1424_v5 }
 0x7bd   :  { %v567_v0 = vcvt.f32.s32 %v566_v61  ;;  %v589_v4 = vsel %vm64_vm0, %v1526_v2, inf  ;;  %v1532_v9 = vsel %vm578_vm6, inf, %v1433_v11 }
 0x7be   :  { %v590_v8 = vmin.f32 %v1520_v62, %v589_v4 }
 0x7bf   :  { %v570_v6 = vadd.s32 %v569_v63, %v567_v0 }
 0x7c0   :  { %v591_v7 = vmin.f32 %v590_v8, %v1532_v9 }
 0x7c1   :  { %v1536_v16 = vsel %vm1908_vm13, %v1436_v15, %v570_v6  ;;  %vm574_vm15 = vcmp.eq.s32.totalorder %v1147_v42, %v570_v6  ;;  %vm575_vm1 = vcmp.eq.s32.totalorder %v1158_v45, %v570_v6  ;;  %vm576_vm2 = vcmp.eq.s32.totalorder %v1175_v51, %v570_v6 }
 0x7c2   :  { %vm580_vm14 = vmand %vm524_vm9, %vm574_vm15  ;;  %592 = vmin.xlane.f32.xlu0 %v591_v7 }
 0x7c3   :  { %vm582_vm12 = vmand %vm526_vm10, %vm576_vm2  ;;  %v1549_v5 = vsel %vm580_vm14, inf, %v1449_v24 }
 0x7c4   :  { %vm581_vm7 = vmand %vm525_vm3, %vm575_vm1  ;;  %v1555_v11 = vsel %vm582_vm12, inf, %v1455_v10 }
 0x7c5   :  { %v594_v15 = vsel %vm64_vm0, %v1555_v11, inf  ;;  %v1561_v12 = vsel %vm581_vm7, inf, %v1461_v21 }
 0x7c6   :  { %v595_v18 = vmin.f32 %v1549_v5, %v594_v15 }
 0x7c8   :  { %v596_v17 = vmin.f32 %v595_v18, %v1561_v12 }
 0x7ca   :  { %597 = vmin.xlane.f32.xlu1 %v596_v17 }
 0x835   :  { %v1564_v24 = vpop.xlane.xlu0 %592 }
 0x836   :  { %vm599_vm9 = vcmp.eq.f32.partialorder %v1520_v62, %v1564_v24  ;;  %vm601_vm10 = vcmp.eq.f32.partialorder %v1526_v2, %v1564_v24  ;;  %vm600_vm3 = vcmp.eq.f32.partialorder %v1532_v9, %v1564_v24 }
 0x837   :  { %v605_v10 = vsel %vm599_vm9, %v1147_v42, 2147483647  ;;  %v607_v21 = vsel %vm601_vm10, %v1149_v43, 2147483647  ;;  %v606_v20 = vsel %vm600_vm3, %v1158_v45, 2147483647 }
 0x838   :  { %v611_v22 = vsel %vm64_vm0, %v607_v21, 2147483647 }
 0x839   :  { %vm612_vm8 = vcmp.lt.s32.totalorder %v605_v10, %v611_v22 }
 0x83a   :  { %v613_v23 = vsel %vm612_vm8, %v605_v10, %v611_v22  ;;  %vm1909_vm8 = vcmask 31744  }
 0x83b   :  { %vm614_vm11 = vcmp.lt.s32.totalorder %v613_v23, %v606_v20 }
 0x83c   :  { %v615_v25 = vsel %vm614_vm11, %v613_v23, %v606_v20 }
 0x83d   :  { %v1585_v1 = vpop.xlane.xlu1 %597  ;;  %v617_v3 = vshra.s32 %v615_v25, 16  ;;  %v616_v38 = vand.u32 65535, %v615_v25 }
 0x83e   :  { %vm602_vm6 = vcmp.eq.f32.partialorder %v1549_v5, %v1585_v1  ;;  %vm604_vm15 = vcmp.eq.f32.partialorder %v1555_v11, %v1585_v1  ;;  %vm603_vm1 = vcmp.eq.f32.partialorder %v1561_v12, %v1585_v1 }
 0x83f   :  { %v608_v27 = vsel %vm602_vm6, %v1147_v42, 2147483647  ;;  %v610_v29 = vsel %vm604_vm15, %v1175_v51, 2147483647  ;;  %v619_v30 = vcvt.s32.f32 %v617_v3  ;;  %v609_v32 = vsel %vm603_vm1, %v1158_v45, 2147483647 }
 0x840   :  { %v630_v14 = vsel %vm64_vm0, %v610_v29, 2147483647  ;;  %v618_v40 = vcvt.s32.f32 %v616_v38 }
 0x841   :  { %620 = vmin.xlane.f32.xlu2 %v619_v30  ;;  %vm631_vm2 = vcmp.lt.s32.totalorder %v608_v27, %v630_v14 }
 0x842   :  { %v632_v33 = vsel %vm631_vm2, %v608_v27, %v630_v14 }
 0x843   :  { %vm633_vm14 = vcmp.lt.s32.totalorder %v632_v33, %v609_v32 }
 0x844   :  { %v634_v34 = vsel %vm633_vm14, %v632_v33, %v609_v32 }
 0x845   :  { %v636_v35 = vshra.s32 %v634_v34, 16  ;;  %v635_v46 = vand.u32 65535, %v634_v34 }
 0x847   :  { %v638_v36 = vcvt.s32.f32 %v636_v35  ;;  %v637_v48 = vcvt.s32.f32 %v635_v46 }
 0x849   :  { %639 = vmin.xlane.f32.xlu0 %v638_v36 }
 0x8b4   :  { %v621_v39 = vpop.xlane.xlu2 %620 }
 0x8b5   :  { %vm622_vm12 = vcmp.eq.f32.partialorder %v619_v30, %v621_v39  ;;  %v627_v50 = vcvt.f32.s32 %v621_v39 }
 0x8b6   :  { %v623_v41 = vsel %vm622_vm12, %v618_v40, inf }
 0x8b7   :  { %624 = vmin.xlane.f32.xlu1 %v623_v41  ;;  %v628_v54 = vshll.u32 %v627_v50, 16 }
 0x8bc   :  { %v640_v47 = vpop.xlane.xlu0 %639 }
 0x8bd   :  { %vm641_vm7 = vcmp.eq.f32.partialorder %v638_v36, %v640_v47  ;;  %v646_v57 = vcvt.f32.s32 %v640_v47 }
 0x8be   :  { %v642_v49 = vsel %vm641_vm7, %v637_v48, inf }
 0x8bf   :  { %643 = vmin.xlane.f32.xlu2 %v642_v49 }
 0x92a   :  { %v625_v52 = vpop.xlane.xlu1 %624 }
 0x92b   :  { %v626_v55 = vcvt.f32.s32 %v625_v52 }
 0x92d   :  { %v629_v56 = vadd.s32 %v628_v54, %v626_v55 }
 0x92f   :  { %v1608_v58 = vsel %vm1909_vm8, %v1508_v60, %v629_v56  ;;  %vm649_vm11 = vcmp.eq.s32.totalorder %v1147_v42, %v629_v56  ;;  %vm651_vm2 = vcmp.eq.s32.totalorder %v1149_v43, %v629_v56  ;;  %vm650_vm14 = vcmp.eq.s32.totalorder %v1158_v45, %v629_v56 }
 0x930   :  { %vm655_vm12 = vmand %vm599_vm9, %vm649_vm11  ;;  %v647_v60 = vshll.u32 %v646_v57, 16 }
 0x931   :  { %vm657_vm7 = vmand %vm601_vm10, %vm651_vm2  ;;  %v1620_v61 = vsel %vm655_vm12, inf, %v1520_v62 }
 0x932   :  { %v644_v59 = vpop.xlane.xlu2 %643  ;;  %vm656_vm13 = vmand %vm600_vm3, %vm650_vm14  ;;  %v1626_v0 = vsel %vm657_vm7, inf, %v1526_v2 }
 0x933   :  { %v645_v63 = vcvt.f32.s32 %v644_v59  ;;  %v667_v4 = vsel %vm64_vm0, %v1626_v0, inf  ;;  %v1632_v7 = vsel %vm656_vm13, inf, %v1532_v9 }
 0x934   :  { %v668_v8 = vmin.f32 %v1620_v61, %v667_v4 }
 0x935   :  { %v648_v6 = vadd.s32 %v647_v60, %v645_v63 }
 0x936   :  { %v669_v15 = vmin.f32 %v668_v8, %v1632_v7 }
 0x937   :  { %v1636_v62 = vsel %vm1909_vm8, %v1536_v16, %v648_v6  ;;  %vm652_vm9 = vcmp.eq.s32.totalorder %v1147_v42, %v648_v6  ;;  %vm653_vm10 = vcmp.eq.s32.totalorder %v1158_v45, %v648_v6  ;;  %vm654_vm3 = vcmp.eq.s32.totalorder %v1175_v51, %v648_v6 }
 0x938   :  { %vm658_vm11 = vmand %vm602_vm6, %vm652_vm9  ;;  %670 = vmin.xlane.f32.xlu0 %v669_v15 }
 0x939   :  { %vm660_vm13 = vmand %vm604_vm15, %vm654_vm3  ;;  %v1649_v2 = vsel %vm658_vm11, inf, %v1549_v5 }
 0x93a   :  { %vm659_vm2 = vmand %vm603_vm1, %vm653_vm10  ;;  %v1655_v9 = vsel %vm660_vm13, inf, %v1555_v11 }
 0x93b   :  { %v672_v16 = vsel %vm64_vm0, %v1655_v9, inf  ;;  %v1661_v17 = vsel %vm659_vm2, inf, %v1561_v12 }
 0x93c   :  { %v673_v18 = vmin.f32 %v1649_v2, %v672_v16 }
 0x93e   :  { %v674_v10 = vmin.f32 %v673_v18, %v1661_v17 }
 0x940   :  { %675 = vmin.xlane.f32.xlu1 %v674_v10 }
 0x9ab   :  { %v1664_v5 = vpop.xlane.xlu0 %670 }
 0x9ac   :  { %vm677_vm6 = vcmp.eq.f32.partialorder %v1620_v61, %v1664_v5  ;;  %vm679_vm15 = vcmp.eq.f32.partialorder %v1626_v0, %v1664_v5  ;;  %vm678_vm1 = vcmp.eq.f32.partialorder %v1632_v7, %v1664_v5 }
 0x9ad   :  { %v683_v11 = vsel %vm677_vm6, %v1147_v42, 2147483647  ;;  %v685_v12 = vsel %vm679_vm15, %v1149_v43, 2147483647  ;;  %v684_v22 = vsel %vm678_vm1, %v1158_v45, 2147483647 }
 0x9ae   :  { %v689_v21 = vsel %vm64_vm0, %v685_v12, 2147483647 }
 0x9af   :  { %vm690_vm14 = vcmp.lt.s32.totalorder %v683_v11, %v689_v21 }
 0x9b0   :  { %v691_v20 = vsel %vm690_vm14, %v683_v11, %v689_v21  ;;  %vm1910_vm14 = vcmask 39936  }
 0x9b1   :  { %vm692_vm12 = vcmp.lt.s32.totalorder %v691_v20, %v684_v22 }
 0x9b2   :  { %v693_v23 = vsel %vm692_vm12, %v691_v20, %v684_v22 }
 0x9b3   :  { %v1685_v25 = vpop.xlane.xlu1 %675  ;;  %v695_v3 = vshra.s32 %v693_v23, 16  ;;  %v694_v38 = vand.u32 65535, %v693_v23 }
 0x9b4   :  { %vm680_vm7 = vcmp.eq.f32.partialorder %v1649_v2, %v1685_v25  ;;  %vm682_vm9 = vcmp.eq.f32.partialorder %v1655_v9, %v1685_v25  ;;  %vm681_vm10 = vcmp.eq.f32.partialorder %v1661_v17, %v1685_v25 }
 0x9b5   :  { %v686_v27 = vsel %vm680_vm7, %v1147_v42, 2147483647  ;;  %v688_v29 = vsel %vm682_vm9, %v1175_v51, 2147483647  ;;  %v697_v30 = vcvt.s32.f32 %v695_v3  ;;  %v687_v32 = vsel %vm681_vm10, %v1158_v45, 2147483647 }
 0x9b6   :  { %v708_v14 = vsel %vm64_vm0, %v688_v29, 2147483647  ;;  %v696_v40 = vcvt.s32.f32 %v694_v38 }
 0x9b7   :  { %698 = vmin.xlane.f32.xlu2 %v697_v30  ;;  %vm709_vm3 = vcmp.lt.s32.totalorder %v686_v27, %v708_v14 }
 0x9b8   :  { %v710_v33 = vsel %vm709_vm3, %v686_v27, %v708_v14 }
 0x9b9   :  { %vm711_vm11 = vcmp.lt.s32.totalorder %v710_v33, %v687_v32 }
 0x9ba   :  { %v712_v34 = vsel %vm711_vm11, %v710_v33, %v687_v32 }
 0x9bb   :  { %v714_v35 = vshra.s32 %v712_v34, 16  ;;  %v713_v46 = vand.u32 65535, %v712_v34 }
 0x9bd   :  { %v716_v36 = vcvt.s32.f32 %v714_v35  ;;  %v715_v48 = vcvt.s32.f32 %v713_v46 }
 0x9bf   :  { %717 = vmin.xlane.f32.xlu0 %v716_v36 }
 0xa2a   :  { %v699_v39 = vpop.xlane.xlu2 %698 }
 0xa2b   :  { %vm700_vm13 = vcmp.eq.f32.partialorder %v697_v30, %v699_v39  ;;  %v705_v50 = vcvt.f32.s32 %v699_v39 }
 0xa2c   :  { %v701_v41 = vsel %vm700_vm13, %v696_v40, inf }
 0xa2d   :  { %702 = vmin.xlane.f32.xlu1 %v701_v41  ;;  %v706_v54 = vshll.u32 %v705_v50, 16 }
 0xa32   :  { %v718_v47 = vpop.xlane.xlu0 %717 }
 0xa33   :  { %vm719_vm2 = vcmp.eq.f32.partialorder %v716_v36, %v718_v47  ;;  %v724_v57 = vcvt.f32.s32 %v718_v47 }
 0xa34   :  { %v720_v49 = vsel %vm719_vm2, %v715_v48, inf }
 0xa35   :  { %721 = vmin.xlane.f32.xlu2 %v720_v49 }
 0xaa0   :  { %v703_v52 = vpop.xlane.xlu1 %702 }
 0xaa1   :  { %v704_v55 = vcvt.f32.s32 %v703_v52 }
 0xaa3   :  { %v707_v56 = vadd.s32 %v706_v54, %v704_v55 }
 0xaa5   :  { %v1708_v59 = vsel %vm1910_vm14, %v1608_v58, %v707_v56  ;;  %vm727_vm12 = vcmp.eq.s32.totalorder %v1147_v42, %v707_v56  ;;  %vm729_vm3 = vcmp.eq.s32.totalorder %v1149_v43, %v707_v56  ;;  %vm728_vm11 = vcmp.eq.s32.totalorder %v1158_v45, %v707_v56 }
 0xaa6   :  { %vm733_vm13 = vmand %vm677_vm6, %vm727_vm12  ;;  %v725_v58 = vshll.u32 %v724_v57, 16 }
 0xaa7   :  { %vm735_vm2 = vmand %vm679_vm15, %vm729_vm3  ;;  %v1720_v63 = vsel %vm733_vm13, inf, %v1620_v61 }
 0xaa8   :  { %v722_v60 = vpop.xlane.xlu2 %721  ;;  %vm734_vm8 = vmand %vm678_vm1, %vm728_vm11  ;;  %v1726_v6 = vsel %vm735_vm2, inf, %v1626_v0 }
 0xaa9   :  { %v723_v4 = vcvt.f32.s32 %v722_v60  ;;  %v745_v8 = vsel %vm64_vm0, %v1726_v6, inf  ;;  %v1732_v18 = vsel %vm734_vm8, inf, %v1632_v7  ;;  %v1040_v60 = vld [vmem:[#allocation3] sm:$0xff] }
 0xaaa   :  { %v746_v16 = vmin.f32 %v1720_v63, %v745_v8 }
 0xaab   :  { %v726_v15 = vadd.s32 %v725_v58, %v723_v4 }
 0xaac   :  { %v747_v10 = vmin.f32 %v746_v16, %v1732_v18 }
 0xaad   :  { %v1736_v61 = vsel %vm1910_vm14, %v1636_v62, %v726_v15  ;;  %vm730_vm6 = vcmp.eq.s32.totalorder %v1147_v42, %v726_v15  ;;  %vm731_vm15 = vcmp.eq.s32.totalorder %v1158_v45, %v726_v15  ;;  %vm732_vm1 = vcmp.eq.s32.totalorder %v1175_v51, %v726_v15 }
 0xaae   :  { %vm736_vm12 = vmand %vm680_vm7, %vm730_vm6  ;;  %748 = vmin.xlane.f32.xlu0 %v747_v10 }
 0xaaf   :  { %vm738_vm8 = vmand %vm682_vm9, %vm732_vm1  ;;  %v1749_v0 = vsel %vm736_vm12, inf, %v1649_v2 }
 0xab0   :  { %vm737_vm3 = vmand %vm681_vm10, %vm731_vm15  ;;  %v1755_v7 = vsel %vm738_vm8, inf, %v1655_v9 }
 0xab1   :  { %v750_v62 = vsel %vm64_vm0, %v1755_v7, inf  ;;  %v1761_v12 = vsel %vm737_vm3, inf, %v1661_v17 }
 0xab2   :  { %v751_v11 = vmin.f32 %v1749_v0, %v750_v62 }
 0xab4   :  { %v752_v21 = vmin.f32 %v751_v11, %v1761_v12 }
 0xab6   :  { %753 = vmin.xlane.f32.xlu1 %v752_v21 }
 0xb21   :  { %v1764_v2 = vpop.xlane.xlu0 %748 }
 0xb22   :  { %vm755_vm7 = vcmp.eq.f32.partialorder %v1720_v63, %v1764_v2  ;;  %vm757_vm9 = vcmp.eq.f32.partialorder %v1726_v6, %v1764_v2  ;;  %vm756_vm10 = vcmp.eq.f32.partialorder %v1732_v18, %v1764_v2 }
 0xb23   :  { %v761_v9 = vsel %vm755_vm7, %v1147_v42, 2147483647  ;;  %v763_v17 = vsel %vm757_vm9, %v1149_v43, 2147483647  ;;  %v762_v20 = vsel %vm756_vm10, %v1158_v45, 2147483647 }
 0xb24   :  { %v767_v22 = vsel %vm64_vm0, %v763_v17, 2147483647  ;;  %v1041_v17 = vld [vmem:[#allocation3 + $0x8] sm:$0xff] }
 0xb25   :  { %vm768_vm11 = vcmp.lt.s32.totalorder %v761_v9, %v767_v22 }
 0xb26   :  { %v769_v23 = vsel %vm768_vm11, %v761_v9, %v767_v22  ;;  %vm898_vm11 = vcmask 48128  }
 0xb27   :  { %vm770_vm13 = vcmp.lt.s32.totalorder %v769_v23, %v762_v20 }
 0xb28   :  { %v771_v3 = vsel %vm770_vm13, %v769_v23, %v762_v20 }
 0xb29   :  { %v1785_v27 = vpop.xlane.xlu1 %753  ;;  %v773_v29 = vshra.s32 %v771_v3, 16  ;;  %v772_v39 = vand.u32 65535, %v771_v3  ;;  %v884_v3 = vsel %vm883_vm4, %v1151_v44, %v1258_v13 }
 0xb2a   :  { %vm758_vm2 = vcmp.eq.f32.partialorder %v1749_v0, %v1785_v27  ;;  %vm760_vm6 = vcmp.eq.f32.partialorder %v1755_v7, %v1785_v27  ;;  %vm759_vm15 = vcmp.eq.f32.partialorder %v1761_v12, %v1785_v27 }
 0xb2b   :  { %v764_v43 = vsel %vm758_vm2, %v1147_v42, 2147483647  ;;  %v766_v30 = vsel %vm760_vm6, %v1175_v51, 2147483647  ;;  %v775_v14 = vcvt.s32.f32 %v773_v29  ;;  %v765_v33 = vsel %vm759_vm15, %v1158_v45, 2147483647 }
 0xb2c   :  { %v786_v32 = vsel %vm64_vm0, %v766_v30, 2147483647  ;;  %v774_v41 = vcvt.s32.f32 %v772_v39 }
 0xb2d   :  { %776 = vmin.xlane.f32.xlu2 %v775_v14  ;;  %vm787_vm1 = vcmp.lt.s32.totalorder %v764_v43, %v786_v32 }
 0xb2e   :  { %v788_v34 = vsel %vm787_vm1, %v764_v43, %v786_v32 }
 0xb2f   :  { %vm789_vm12 = vcmp.lt.s32.totalorder %v788_v34, %v765_v33 }
 0xb30   :  { %v790_v35 = vsel %vm789_vm12, %v788_v34, %v765_v33 }
 0xb31   :  { %v792_v36 = vshra.s32 %v790_v35, 16  ;;  %v791_v46 = vand.u32 65535, %v790_v35 }
 0xb33   :  { %v794_v38 = vcvt.s32.f32 %v792_v36  ;;  %v793_v48 = vcvt.s32.f32 %v791_v46 }
 0xb35   :  { %795 = vmin.xlane.f32.xlu0 %v794_v38 }
 0xba0   :  { %v777_v40 = vpop.xlane.xlu2 %776 }
 0xba1   :  { %vm778_vm8 = vcmp.eq.f32.partialorder %v775_v14, %v777_v40  ;;  %v783_v50 = vcvt.f32.s32 %v777_v40 }
 0xba2   :  { %v779_v51 = vsel %vm778_vm8, %v774_v41, inf }
 0xba3   :  { %780 = vmin.xlane.f32.xlu1 %v779_v51  ;;  %v784_v54 = vshll.u32 %v783_v50, 16 }
 0xba8   :  { %v796_v47 = vpop.xlane.xlu0 %795 }
 0xba9   :  { %vm797_vm3 = vcmp.eq.f32.partialorder %v794_v38, %v796_v47  ;;  %v802_v57 = vcvt.f32.s32 %v796_v47 }
 0xbaa   :  { %v798_v49 = vsel %vm797_vm3, %v793_v48, inf }
 0xbab   :  { %799 = vmin.xlane.f32.xlu2 %v798_v49  ;;  %v803_v15 = vshll.u32 %v802_v57, 16 }
 0xc16   :  { %v781_v52 = vpop.xlane.xlu1 %780 }
 0xc17   :  { %v782_v55 = vcvt.f32.s32 %v781_v52 }
 0xc19   :  { %v785_v56 = vadd.s32 %v784_v54, %v782_v55 }
 0xc1b   :  { %vm805_vm13 = vcmp.eq.s32.totalorder %v1147_v42, %v785_v56  ;;  %vm807_vm1 = vcmp.eq.s32.totalorder %v1040_v60, %v785_v56  ;;  %v1809_v58 = vsel %vm898_vm11, %v1708_v59, %v785_v56  ;;  %vm806_vm12 = vcmp.eq.s32.totalorder %v1158_v45, %v785_v56 }
 0xc1c   :  { %vm811_vm8 = vmand %vm755_vm7, %vm805_vm13 }
 0xc1d   :  { %vm813_vm3 = vmand %vm757_vm9, %vm807_vm1  ;;  %v817_v8 = vsel %vm811_vm8, inf, %v1720_v63 }
 0xc1e   :  { %v800_v4 = vpop.xlane.xlu2 %799  ;;  %vm812_vm14 = vmand %vm756_vm10, %vm806_vm12  ;;  %v819_v59 = vsel %vm813_vm3, inf, %v1726_v6  ;;  %vm1913_vm12 = vcmask 39936  }
 0xc1f   :  { %v801_v16 = vcvt.f32.s32 %v800_v4  ;;  %v823_v10 = vsel %vm64_vm0, %v819_v59, inf  ;;  %v818_v21 = vsel %vm812_vm14, inf, %v1732_v18 }
 0xc20   :  { %v824_v11 = vmin.f32 %v817_v8, %v823_v10 }
 0xc21   :  { %v804_v62 = vadd.s32 %v803_v15, %v801_v16 }
 0xc22   :  { %v825_v9 = vmin.f32 %v824_v11, %v818_v21 }
 0xc23   :  { %vm808_vm7 = vcmp.eq.s32.totalorder %v1147_v42, %v804_v62  ;;  %vm810_vm9 = vcmp.eq.s32.totalorder %v1041_v17, %v804_v62  ;;  %vm809_vm13 = vcmp.eq.s32.totalorder %v1158_v45, %v804_v62  ;;  %v1832_v63 = vsel %vm898_vm11, %v1736_v61, %v804_v62 }
 0xc24   :  { %vm814_vm1 = vmand %vm758_vm2, %vm808_vm7  ;;  %826 = vmin.xlane.f32.xlu0 %v825_v9  ;;  %vm1911_vm2 = vcmask 23552  }
 0xc25   :  { %vm816_vm14 = vmand %vm760_vm6, %vm810_vm9  ;;  %v820_v6 = vsel %vm814_vm1, inf, %v1749_v0  ;;  %v887_v0 = vsel %vm886_vm5, %v884_v3, %v1360_v26  ;;  %vm1912_vm6 = vcmask 31744  }
 0xc26   :  { %vm815_vm10 = vmand %vm759_vm15, %vm809_vm13  ;;  %v822_v18 = vsel %vm816_vm14, inf, %v1755_v7  ;;  %v890_v29 = vsel %vm1911_vm2, %v887_v0, %v1464_v19  ;;  %vm901_vm15 = vcmask 56320   ;;  %v885_v19 = vsel %vm883_vm4, %v1177_v53, %v1279_v37 }
 0xc27   :  { %v828_v22 = vsel %vm64_vm0, %v822_v18, inf  ;;  %v821_v23 = vsel %vm815_vm10, inf, %v1761_v12  ;;  %v893_v7 = vsel %vm1912_vm6, %v890_v29, %v1564_v24  ;;  %vm1914_vm13 = vmmov %vm1911_vm2 }
 0xc28   :  { %v829_v20 = vmin.f32 %v820_v6, %v828_v22  ;;  %v896_v43 = vsel %vm1913_vm12, %v893_v7, %v1664_v5  ;;  %v888_v5 = vsel %vm886_vm5, %v885_v19, %v1381_v31  ;;  %vm1915_vm1 = vmmov %vm1912_vm6 }
 0xc29   :  { %v899_v12 = vsel %vm898_vm11, %v896_v43, %v1764_v2  ;;  %v891_v2 = vsel %vm1914_vm13, %v888_v5, %v1485_v28  ;;  %vm1916_vm10 = vmmov %vm1913_vm12 }
 0xc2a   :  { %v830_v61 = vmin.f32 %v829_v20, %v821_v23  ;;  %v894_v33 = vsel %vm1915_vm1, %v891_v2, %v1585_v1 }
 0xc2b   :  { %v897_v34 = vsel %vm1916_vm10, %v894_v33, %v1685_v25 }
 0xc2c   :  { %831 = vmin.xlane.f32.xlu1 %v830_v61  ;;  %v900_v37 = vsel %vm898_vm11, %v897_v34, %v1785_v27 }
 0xc97   :  { %v827_v30 = vpop.xlane.xlu0 %826 }
 0xc98   :  { %vm833_vm8 = vcmp.eq.f32.partialorder %v817_v8, %v827_v30  ;;  %vm835_vm3 = vcmp.eq.f32.partialorder %v819_v59, %v827_v30  ;;  %v902_v44 = vsel %vm901_vm15, %v899_v12, %v827_v30  ;;  %vm834_vm7 = vcmp.eq.f32.partialorder %v818_v21, %v827_v30 }
 0xc99   :  { %v839_v13 = vsel %vm833_vm8, %v1147_v42, 2147483647  ;;  %v841_v26 = vsel %vm835_vm3, %v1040_v60, 2147483647  ;;  %904 = vst.msk [vmem:[#allocation2] sm:$0xff] %vm64_vm0, %v902_v44 }
 0xc9a   :  { %v845_v24 = vsel %vm64_vm0, %v841_v26, 2147483647  ;;  %v840_v14 = vsel %vm834_vm7, %v1158_v45, 2147483647 }
 0xc9b   :  { %vm846_vm9 = vcmp.lt.s32.totalorder %v839_v13, %v845_v24 }
 0xc9c   :  { %v847_v32 = vsel %vm846_vm9, %v839_v13, %v845_v24 }
 0xc9d   :  { %vm848_vm14 = vcmp.lt.s32.totalorder %v847_v32, %v840_v14 }
 0xc9e   :  { %v849_v53 = vsel %vm848_vm14, %v847_v32, %v840_v14 }
 0xc9f   :  { %v832_v35 = vpop.xlane.xlu1 %831  ;;  %v851_v31 = vshra.s32 %v849_v53, 16  ;;  %v850_v46 = vand.u32 65535, %v849_v53 }
 0xca0   :  { %vm836_vm4 = vcmp.eq.f32.partialorder %v820_v6, %v832_v35  ;;  %vm838_vm5 = vcmp.eq.f32.partialorder %v822_v18, %v832_v35  ;;  %v903_v28 = vsel %vm901_vm15, %v900_v37, %v832_v35  ;;  %vm837_vm2 = vcmp.eq.f32.partialorder %v821_v23, %v832_v35 }
 0xca1   :  { %v842_v36 = vsel %vm836_vm4, %v1147_v42, 2147483647  ;;  %v844_v38 = vsel %vm838_vm5, %v1041_v17, 2147483647  ;;  %905 = vst.msk [vmem:[#allocation2 + $0x8] sm:$0xff] %vm64_vm0, %v903_v28  ;;  %v853_v1 = vcvt.s32.f32 %v851_v31  ;;  %v852_v48 = vcvt.s32.f32 %v850_v46 }
 0xca2   :  { %v864_v39 = vsel %vm64_vm0, %v844_v38, 2147483647  ;;  %v843_v25 = vsel %vm837_vm2, %v1158_v45, 2147483647 }
 0xca3   :  { %854 = vmin.xlane.f32.xlu2 %v853_v1  ;;  %vm865_vm6 = vcmp.lt.s32.totalorder %v842_v36, %v864_v39 }
 0xca4   :  { %v866_v27 = vsel %vm865_vm6, %v842_v36, %v864_v39 }
 0xca5   :  { %vm867_vm11 = vcmp.lt.s32.totalorder %v866_v27, %v843_v25 }
 0xca6   :  { %v868_v40 = vsel %vm867_vm11, %v866_v27, %v843_v25 }
 0xca7   :  { %v870_v41 = vshra.s32 %v868_v40, 16  ;;  %v869_v49 = vand.u32 65535, %v868_v40 }
 0xca9   :  { %v872_v51 = vcvt.s32.f32 %v870_v41  ;;  %v871_v52 = vcvt.s32.f32 %v869_v49 }
 0xcab   :  { %873 = vmin.xlane.f32.xlu0 %v872_v51 }
 0xd16   :  { %v855_v47 = vpop.xlane.xlu2 %854 }
 0xd17   :  { %vm856_vm12 = vcmp.eq.f32.partialorder %v853_v1, %v855_v47  ;;  %v861_v55 = vcvt.f32.s32 %v855_v47 }
 0xd18   :  { %v857_v42 = vsel %vm856_vm12, %v852_v48, inf }
 0xd19   :  { %858 = vmin.xlane.f32.xlu1 %v857_v42  ;;  %v862_v56 = vshll.u32 %v861_v55, 16 }
 0xd1e   :  { %v874_v50 = vpop.xlane.xlu0 %873 }
 0xd1f   :  { %vm875_vm8 = vcmp.eq.f32.partialorder %v872_v51, %v874_v50  ;;  %v880_v4 = vcvt.f32.s32 %v874_v50 }
 0xd20   :  { %v876_v54 = vsel %vm875_vm8, %v871_v52, inf }
 0xd21   :  { %877 = vmin.xlane.f32.xlu2 %v876_v54  ;;  %v881_v16 = vshll.u32 %v880_v4, 16 }
 0xd8c   :  { %v859_v45 = vpop.xlane.xlu1 %858 }
 0xd8d   :  { %v860_v57 = vcvt.f32.s32 %v859_v45 }
 0xd8f   :  { %v863_v60 = vadd.s32 %v862_v56, %v860_v57 }
 0xd91   :  { %v918_v8 = vsel %vm901_vm15, %v1809_v58, %v863_v60 }
 0xd92   :  { %920 = vst.msk [vmem:[#allocation3] sm:$0xff] %vm64_vm0, %v918_v8 }
 0xd94   :  { %v878_v15 = vpop.xlane.xlu2 %877 }
 0xd95   :  { %v879_v59 = vcvt.f32.s32 %v878_v15 }
 0xd97   :  { %v882_v10 = vadd.s32 %v881_v16, %v879_v59 }
 0xd99   :  { %v919_v62 = vsel %vm901_vm15, %v1832_v63, %v882_v10 }
 0xd9a   :  { %921 = vst.msk [vmem:[#allocation3 + $0x8] sm:$0xff] %vm64_vm0, %v919_v62 }
 0xd9b PF:  { %v925_v11 = vld [vmem:[#allocation2] sm:$0xff]  ;;  %v926_v21 = vld [vmem:[#allocation2 + $0x8] sm:$0xff]  ;;  %v930_v9 = vld [vmem:[#allocation3] sm:$0xff] }
 0xd9c   :  { %928 = vst.msk [vmem:[%s1906_s4] sm:$0xff] %vm64_vm0, %v925_v11 }
 0xd9d   :  { %929 = vst.msk [vmem:[%s1906_s4 + $0x8] sm:$0xff] %vm64_vm0, %v926_v21 }
 0xd9e   :  { %932 = vst.msk [vmem:[%s1907_s5] sm:$0xff] %vm64_vm0, %v930_v9 }
 0xda1   :  { %v931_v58 = vld [vmem:[#allocation3 + $0x8] sm:$0xff] }
 0xda2   :  { %933 = vst.msk [vmem:[%s1907_s5 + $0x8] sm:$0xff] %vm64_vm0, %v931_v58 }
 0xda3   :  { %942 = vsyncpa [#allocation5], 1 }

</bundles_post_ra>
